<compile_context>
chip_gen: v7x
topology: tpu7x:2x2x1
jax: 0.10.0
libtpu: 0.0.40
codegen_flags: <defaults>
</compile_context>

<pallas_src>
import functools

import jax
import jax.numpy as jnp
import numpy as np
from jax.experimental import pallas as pl
from jax.experimental.pallas import tpu as pltpu

K = 7            # depthwise kernel size
P = 3            # padding = (7 - 1) // 2
PB = 2           # halo pair-rows before the image in the row-paired layout
ND_FACTOR = 5    # number of banded matrices per depthwise conv in the paired layout


def block_kernel(x_ref, w128_ref, wg_ref, bias_ref, o_ref, pad2_ref,
                 *, Bt, Hh, HALF, WC2, F3):
    """One batch-block (Bt images) per grid step.

    Layout: image rows packed two-per-sublane-row ("pair rows"), lanes = 2*W*C,
    so everything is lane-dense and the output store needs no relayout.
    """
    ND = ND_FACTOR * WC2                       # width of one conv's banded-matrix slab

    x3 = x_ref[...]                            # (Bt, Hh, WC2) H-padded input
    xf = x3.reshape(Bt * Hh, WC2)

    def dwconv_pairs(flat_in, w_band_cat, bias_row):
        # 7x7 depthwise conv = ONE MXU matmul against 5 concatenated banded
        # (WC2, WC2) matrices (kw taps + W-boundary zeros baked in), then 5
        # pair-row-shifted slice-adds (balanced tree) for the kh accumulation.
        y = jnp.dot(flat_in, w_band_cat, preferred_element_type=jnp.float32)
        y = y.reshape(Bt, Hh, ND)
        p = [y[:, d:d + HALF, d * WC2:(d + 1) * WC2] for d in range(ND_FACTOR)]
        return ((p[0] + p[1]) + (p[2] + p[3])) + (p[4] + bias_row)

    # ---- dwconv 7x7 (+BN folded) ---------------------------------------------
    y1 = dwconv_pairs(xf, w128_ref[:, 0:ND], bias_ref[0:1, 0:WC2])  # (Bt, HALF, WC2)

    # ---- fused f1|f2 1x1 (block-diagonal) -> ReLU6(x1)*x2 -> g 1x1 (+BN) ------
    y1f = y1.reshape(Bt * HALF, WC2)
    z = (jnp.dot(y1f, w128_ref[:, ND:ND + 2 * F3], preferred_element_type=jnp.float32)
         + bias_ref[0:1, WC2:WC2 + 2 * F3])
    u = jnp.clip(z[:, 0:F3], 0.0, 6.0) * z[:, F3:2 * F3]
    gz = (jnp.dot(u, wg_ref[...], preferred_element_type=jnp.float32)
          + bias_ref[0:1, WC2 + 2 * F3:2 * WC2 + 2 * F3])

    # ---- stage gz through the H-padded scratch: zero ONLY the halo pair rows
    #      (runs every step -> correct under megacore batch sharding), then one
    #      bulk interior store.
    pad2_ref[:, 0:PB, :] = jnp.zeros((Bt, PB, WC2), jnp.float32)
    pad2_ref[:, PB + HALF:Hh, :] = jnp.zeros((Bt, Hh - PB - HALF, WC2), jnp.float32)
    pad2_ref[:, PB:PB + HALF, :] = gz.reshape(Bt, HALF, WC2)

    # ---- dwconv2 7x7 (bias, no BN) --------------------------------------------
    y2 = dwconv_pairs(pad2_ref[...].reshape(Bt * Hh, WC2),
                      w128_ref[:, ND + 2 * F3:2 * ND + 2 * F3],
                      bias_ref[0:1, 2 * WC2 + 2 * F3:3 * WC2 + 2 * F3])

    # ---- residual (drop_path = Identity); lane-dense (.., 128) store ----------
    o_ref[...] = (x3[:, PB:PB + HALF, :] + y2).astype(o_ref.dtype)


def _paired_band_cat(w_kkc, W, C):
    """Banded matrices realizing a 7x7 depthwise conv in the row-paired layout.

    w_kkc: (K, K, C) per-channel weights.  Returns [M_0 | .. | M_4] of shape
    (2*W*C, 5*2*W*C) such that, with padded pair-row q holding image rows
    2*(q - PB) + a (a in {0,1}, zero outside [0, H)):
        out_pair[r] = sum_d  in_pair[r + d] @ M_d .
    """
    WC = W * C
    # kw shift matrices with the W-boundary zeros baked in.
    shifts = []
    for kw in range(K):
        s = np.zeros((W, W), np.float32)
        for w_out in range(W):
            w_in = w_out + kw - P
            if 0 <= w_in < W:
                s[w_in, w_out] = 1.0
        shifts.append(s)
    # per-kh (W*C, W*C) band: [(w_in, c), (w_out, c)] = w[kh, w_in - w_out + P, c]
    bands = [sum(jnp.kron(shifts[kw], jnp.diag(w_kkc[kh, kw])) for kw in range(K))
             for kh in range(K)]
    zero = jnp.zeros((WC, WC), jnp.float32)
    mats = []
    for d in range(ND_FACTOR):
        rows = []
        for a in range(2):            # within-pair row of the INPUT
            cols = []
            for b in range(2):        # within-pair row of the OUTPUT
                kh = 2 * d + a - b - 1
                cols.append(bands[kh] if 0 <= kh < K else zero)
            rows.append(jnp.concatenate(cols, axis=1))
        mats.append(jnp.concatenate(rows, axis=0))          # (2WC, 2WC)
    return jnp.concatenate(mats, axis=1)                      # (2WC, 5*2WC)


def make_params(dim=4, mlp_ratio=3, seed=0):
    """Random torch-layout params with eval-mode BatchNorm folded; compact form:
    dw weights (K, K, C), 1x1 weights (Cin, Cout), biases (Cout,)."""
    key = jax.random.PRNGKey(seed)
    ks = jax.random.split(key, 10)
    s = 0.2
    dw1_w = s * jax.random.normal(ks[0], (dim, 1, K, K), jnp.float32)
    dw1_b = s * jax.random.normal(ks[1], (dim,), jnp.float32)
    f1_w = s * jax.random.normal(ks[2], (mlp_ratio * dim, dim, 1, 1), jnp.float32)
    f1_b = s * jax.random.normal(ks[3], (mlp_ratio * dim,), jnp.float32)
    f2_w = s * jax.random.normal(ks[4], (mlp_ratio * dim, dim, 1, 1), jnp.float32)
    f2_b = s * jax.random.normal(ks[5], (mlp_ratio * dim,), jnp.float32)
    g_w = s * jax.random.normal(ks[6], (dim, mlp_ratio * dim, 1, 1), jnp.float32)
    g_b = s * jax.random.normal(ks[7], (dim,), jnp.float32)
    dw2_w = s * jax.random.normal(ks[8], (dim, 1, K, K), jnp.float32)
    dw2_b = s * jax.random.normal(ks[9], (dim,), jnp.float32)

    # BatchNorm (eval, fresh stats): gamma=1, beta=0, mean=0, var=1, eps=1e-5
    # -> folds into the preceding conv as a pure 1/sqrt(1+eps) scale.
    # TODO(synk): fold real running stats / affine params here for a trained model.
    bn_scale = 1.0 / jnp.sqrt(1.0 + 1e-5)

    return (jnp.transpose(dw1_w[:, 0], (1, 2, 0)) * bn_scale,    # (K, K, C)
            dw1_b * bn_scale,
            f1_w[:, :, 0, 0].T, f1_b,                             # (C, 3C), (3C,)
            f2_w[:, :, 0, 0].T, f2_b,
            (g_w[:, :, 0, 0] * bn_scale).T, g_b * bn_scale,       # (3C, C), (C,)
            jnp.transpose(dw2_w[:, 0], (1, 2, 0)), dw2_b)


def prepare_weights(params, W):
    """Kernel-layout weights, collapsed into 3 arrays (done once, outside jit)."""
    (dw1_w, dw1_b, f1_w, f1_b, f2_w, f2_b, g_w, g_b, dw2_w, dw2_b) = params
    C = dw1_w.shape[-1]

    dw1_cat = _paired_band_cat(dw1_w, W, C)                   # (2WC, 5*2WC)
    dw2_cat = _paired_band_cat(dw2_w, W, C)
    eye2w = jnp.eye(2 * W, dtype=jnp.float32)
    # TODO(synk): the block-diagonal (kron) 1x1-conv weights scale as O((W*C)*(W*3C));
    # at production StarNet channel counts switch to a true (pixels, C) x (C, 3C)
    # contraction (or per-W-tile block diagonal) and set vmem_limit_bytes explicitly.
    f12 = jnp.concatenate([jnp.kron(eye2w, f1_w), jnp.kron(eye2w, f2_w)], axis=1)
    wg = jnp.kron(eye2w, g_w)                                  # (2W*3C, 2WC)

    w128 = jnp.concatenate([dw1_cat, f12, dw2_cat], axis=1)    # (2WC, 10*2WC + 2*2W*3C)
    bias = jnp.concatenate([jnp.tile(dw1_b, 2 * W),
                            jnp.tile(f1_b, 2 * W), jnp.tile(f2_b, 2 * W),
                            jnp.tile(g_b, 2 * W),
                            jnp.tile(dw2_b, 2 * W)]).reshape(1, -1)
    # TODO(synk): on v6e/v7x cast w128/wg and the MXU operands to bf16 for 2x MXU
    # throughput and half the weight DMA; kept f32 here to match the f32 reference.
    return (w128, wg, bias)


def _pick_bt(B):
    # Batch-block size: amortize the ~0.35us per-grid-step overhead and grow the
    # MXU M dimension (Bt*H/2 rows), but keep the grid length >= 2 so both v7x
    # TensorCores get work.  (Bt=16 -> 128 matmul rows = a full v5e MXU tile.)
    for bt in (16, 8, 4, 2):
        if B % bt == 0 and B // bt >= 2:
            return bt
    return 1


@jax.jit
def block_forward(x_nchw, kernel_weights):
    """StarNet Block forward.  NCHW in/out; row-paired lane-dense layout inside."""
    w128, wg, bias = kernel_weights
    x = jnp.transpose(x_nchw, (0, 2, 3, 1)).astype(jnp.float32)    # NHWC
    B, H, W, C = x.shape
    assert H % 2 == 0, "row pairing assumes even H"
    HALF, WC2, F3 = H // 2, 2 * W * C, wg.shape[0]
    Hh = ((HALF + 4 + 7) // 8) * 8       # padded pair-rows (2 halo pairs/side), 8-aligned

    # Pair consecutive image rows onto the lane axis (free view), then pad pair-rows.
    xr = x.reshape(B, HALF, WC2)
    xpad = jnp.pad(xr, ((0, 0), (PB, Hh - PB - HALF), (0, 0)))

    Bt = _pick_bt(B)

    def full(a):
        return pl.BlockSpec(a.shape, lambda b, nd=a.ndim: (0,) * nd)

    out = pl.pallas_call(
        functools.partial(block_kernel, Bt=Bt, Hh=Hh, HALF=HALF, WC2=WC2, F3=F3),
        out_shape=jax.ShapeDtypeStruct((B, HALF, WC2), jnp.float32),
        grid_spec=pltpu.PrefetchScalarGridSpec(
            num_scalar_prefetch=0,
            grid=(B // Bt,),
            in_specs=[pl.BlockSpec((Bt, Hh, WC2), lambda b: (b, 0, 0)),
                      full(w128), full(wg), full(bias)],
            out_specs=pl.BlockSpec((Bt, HALF, WC2), lambda b: (b, 0, 0)),
            scratch_shapes=[pltpu.VMEM((Bt, Hh, WC2), jnp.float32)]),
        compiler_params=pltpu.CompilerParams(
            dimension_semantics=("parallel",)),      # batch-blocks are independent
    )(xpad, w128, wg, bias)

    # (B, H/2, 2*W*C) -> (B, H, W, C) is a free row-major view; back to NCHW.
    return jnp.transpose(out.reshape(B, H, W, C), (0, 3, 1, 2))


def ref_forward(x_nchw, params):
    # Pure-JAX reference (same folded compact parameters), for correctness checking.
    x = jnp.transpose(x_nchw, (0, 2, 3, 1)).astype(jnp.float32)
    dw1_w, dw1_b, f1_w, f1_b, f2_w, f2_b, g_w, g_b, dw2_w, dw2_b = params

    def dwconv(z, w, b):
        _, H, W, _ = z.shape
        zp = jnp.pad(z, ((0, 0), (P, P), (P, P), (0, 0)))
        acc = jnp.zeros_like(z)
        for kh in range(K):
            for kw in range(K):
                acc = acc + zp[:, kh:kh + H, kw:kw + W, :] * w[kh, kw]
        return acc + b

    y = dwconv(x, dw1_w, dw1_b)
    t1 = jnp.einsum('bhwc,cd->bhwd', y, f1_w, precision='highest') + f1_b
    t2 = jnp.einsum('bhwc,cd->bhwd', y, f2_w, precision='highest') + f2_b
    u = jnp.clip(t1, 0.0, 6.0) * t2
    gz = jnp.einsum('bhwd,dc->bhwc', u, g_w, precision='highest') + g_b
    y2 = dwconv(gz, dw2_w, dw2_b)
    return jnp.transpose(x + y2, (0, 3, 1, 2))


if __name__ == "__main__":
    dim, mlp_ratio = 4, 3
    B, Hs, Ws = 2, 16, 16
    params = make_params(dim=dim, mlp_ratio=mlp_ratio, seed=0)
    kweights = prepare_weights(params, Ws)
    x = jax.random.normal(jax.random.PRNGKey(0), (B, dim, Hs, Ws), jnp.float32)

    y = jax.block_until_ready(block_forward(x, kweights))
    y_ref = ref_forward(x, params)

    assert y.shape == x.shape
    np.testing.assert_allclose(np.asarray(y), np.asarray(y_ref), rtol=1e-2, atol=1e-2)
    print("KERNEL_OK")
</pallas_src>

<mosaic_0001>
module attributes {stable_mosaic.version = 11 : i64} {
  func.func @block_kernel(%arg0: i32, %arg1: memref<1x16x128xf32, #tpu.memory_space<vmem>>, %arg2: memref<128x2048xf32, #tpu.memory_space<vmem>>, %arg3: memref<384x128xf32, #tpu.memory_space<vmem>>, %arg4: memref<1x1152xf32, #tpu.memory_space<vmem>>, %arg5: memref<1x8x128xf32, #tpu.memory_space<vmem>>, %arg6: memref<1x16x128xf32, #tpu.memory_space<vmem>>) attributes {dimension_semantics = [#tpu.dimension_semantics<parallel>], iteration_bounds = array<i64: 2>, scalar_prefetch = 0 : i64, scratch_operands = 1 : i64, tpu.core_type = #tpu.core_type<tc>, window_params = [{transform_indices = @transform_0, window_bounds = array<i64: 1, 16, 128>}, {pipeline_mode = #tpu.pipeline_mode<synchronous>, transform_indices = @transform_1, window_bounds = array<i64: 128, 2048>}, {pipeline_mode = #tpu.pipeline_mode<synchronous>, transform_indices = @transform_2, window_bounds = array<i64: 384, 128>}, {pipeline_mode = #tpu.pipeline_mode<synchronous>, transform_indices = @transform_3, window_bounds = array<i64: 1, 1152>}, {transform_indices = @transform_4, window_bounds = array<i64: 1, 8, 128>}]} {
    %c0 = arith.constant 0 : index
    %c0_0 = arith.constant 0 : index
    %c0_1 = arith.constant 0 : index
    %0 = vector.load %arg1[%c0, %c0_0, %c0_1] : memref<1x16x128xf32, #tpu.memory_space<vmem>>, vector<1x16x128xf32>
    %1 = vector.shape_cast %0 : vector<1x16x128xf32> to vector<16x128xf32>
    %c0_2 = arith.constant 0 : index
    %c0_3 = arith.constant 0 : index
    %2 = vector.load %arg2[%c0_2, %c0_3] : memref<128x2048xf32, #tpu.memory_space<vmem>>, vector<128x640xf32>
    %c0_4 = arith.constant 0 : index
    %c0_5 = arith.constant 0 : index
    %3 = vector.load %arg4[%c0_4, %c0_5] : memref<1x1152xf32, #tpu.memory_space<vmem>>, vector<1x128xf32>
    %cst = arith.constant dense<0.000000e+00> : vector<16x640xf32>
    %4 = tpu.matmul %1, %2, %cst {dimension_numbers = #tpu.dot_dimension_numbers<[1], [0], [0], [1], [0, 0, 1, 1], [], []>} : vector<16x128xf32>, vector<128x640xf32>, vector<16x640xf32> -> vector<16x640xf32>
    %5 = vector.shape_cast %4 : vector<16x640xf32> to vector<1x16x640xf32>
    %6 = vector.extract_strided_slice %5 {offsets = [0, 0, 0], sizes = [1, 8, 128], strides = [1, 1, 1]} : vector<1x16x640xf32> to vector<1x8x128xf32>
    %7 = vector.extract_strided_slice %5 {offsets = [0, 1, 128], sizes = [1, 8, 128], strides = [1, 1, 1]} : vector<1x16x640xf32> to vector<1x8x128xf32>
    %8 = vector.extract_strided_slice %5 {offsets = [0, 2, 256], sizes = [1, 8, 128], strides = [1, 1, 1]} : vector<1x16x640xf32> to vector<1x8x128xf32>
    %9 = vector.extract_strided_slice %5 {offsets = [0, 3, 384], sizes = [1, 8, 128], strides = [1, 1, 1]} : vector<1x16x640xf32> to vector<1x8x128xf32>
    %10 = vector.extract_strided_slice %5 {offsets = [0, 4, 512], sizes = [1, 8, 128], strides = [1, 1, 1]} : vector<1x16x640xf32> to vector<1x8x128xf32>
    %11 = arith.addf %6, %7 : vector<1x8x128xf32>
    %12 = arith.addf %8, %9 : vector<1x8x128xf32>
    %13 = arith.addf %11, %12 : vector<1x8x128xf32>
    %14 = vector.shape_cast %3 : vector<1x128xf32> to vector<1x1x128xf32>
    %15 = vector.broadcast %14 : vector<1x1x128xf32> to vector<1x8x128xf32>
    %16 = arith.addf %10, %15 : vector<1x8x128xf32>
    %17 = arith.addf %13, %16 : vector<1x8x128xf32>
    %18 = vector.shape_cast %17 : vector<1x8x128xf32> to vector<8x128xf32>
    %c0_6 = arith.constant 0 : index
    %c640 = arith.constant 640 : index
    %19 = vector.load %arg2[%c0_6, %c640] : memref<128x2048xf32, #tpu.memory_space<vmem>>, vector<128x768xf32>
    %cst_7 = arith.constant dense<0.000000e+00> : vector<8x768xf32>
    %20 = tpu.matmul %18, %19, %cst_7 {dimension_numbers = #tpu.dot_dimension_numbers<[1], [0], [0], [1], [0, 0, 1, 1], [], []>} : vector<8x128xf32>, vector<128x768xf32>, vector<8x768xf32> -> vector<8x768xf32>
    %c0_8 = arith.constant 0 : index
    %c128 = arith.constant 128 : index
    %21 = vector.load %arg4[%c0_8, %c128] : memref<1x1152xf32, #tpu.memory_space<vmem>>, vector<1x768xf32>
    %22 = vector.broadcast %21 : vector<1x768xf32> to vector<8x768xf32>
    %23 = arith.addf %20, %22 : vector<8x768xf32>
    %24 = vector.extract_strided_slice %23 {offsets = [0, 0], sizes = [8, 384], strides = [1, 1]} : vector<8x768xf32> to vector<8x384xf32>
    %cst_9 = arith.constant 0.000000e+00 : f32
    %cst_10 = arith.constant 6.000000e+00 : f32
    %25 = vector.broadcast %cst_9 : f32 to vector<8x384xf32>
    %26 = arith.maximumf %25, %24 : vector<8x384xf32>
    %27 = vector.broadcast %cst_10 : f32 to vector<8x384xf32>
    %28 = arith.minimumf %27, %26 : vector<8x384xf32>
    %29 = vector.extract_strided_slice %23 {offsets = [0, 384], sizes = [8, 384], strides = [1, 1]} : vector<8x768xf32> to vector<8x384xf32>
    %30 = arith.mulf %28, %29 : vector<8x384xf32>
    %c0_11 = arith.constant 0 : index
    %c0_12 = arith.constant 0 : index
    %31 = vector.load %arg3[%c0_11, %c0_12] : memref<384x128xf32, #tpu.memory_space<vmem>>, vector<384x128xf32>
    %cst_13 = arith.constant dense<0.000000e+00> : vector<8x128xf32>
    %32 = tpu.matmul %30, %31, %cst_13 {dimension_numbers = #tpu.dot_dimension_numbers<[1], [0], [0], [1], [0, 0, 1, 1], [], []>} : vector<8x384xf32>, vector<384x128xf32>, vector<8x128xf32> -> vector<8x128xf32>
    %c0_14 = arith.constant 0 : index
    %c896 = arith.constant 896 : index
    %33 = vector.load %arg4[%c0_14, %c896] : memref<1x1152xf32, #tpu.memory_space<vmem>>, vector<1x128xf32>
    %34 = vector.broadcast %33 : vector<1x128xf32> to vector<8x128xf32>
    %35 = arith.addf %32, %34 : vector<8x128xf32>
    %cst_15 = arith.constant 0.000000e+00 : f32
    %36 = vector.broadcast %cst_15 : f32 to vector<1x2x128xf32>
    %c0_16 = arith.constant 0 : index
    %c0_17 = arith.constant 0 : index
    %c0_18 = arith.constant 0 : index
    %37 = vector.load %arg6[%c0_16, %c0_17, %c0_18] : memref<1x16x128xf32, #tpu.memory_space<vmem>>, vector<1x2x128xf32>
    tpu.vector_store %arg6[%c0_16, %c0_17, %c0_18], %36 {strides = array<i32>} : memref<1x16x128xf32, #tpu.memory_space<vmem>>, vector<1x2x128xf32>,
    %cst_19 = arith.constant 0.000000e+00 : f32
    %38 = vector.broadcast %cst_19 : f32 to vector<1x6x128xf32>
    %c0_20 = arith.constant 0 : index
    %c10 = arith.constant 10 : index
    %c0_21 = arith.constant 0 : index
    %39 = vector.load %arg6[%c0_20, %c10, %c0_21] : memref<1x16x128xf32, #tpu.memory_space<vmem>>, vector<1x6x128xf32>
    tpu.vector_store %arg6[%c0_20, %c10, %c0_21], %38 {strides = array<i32>} : memref<1x16x128xf32, #tpu.memory_space<vmem>>, vector<1x6x128xf32>,
    %40 = vector.shape_cast %35 : vector<8x128xf32> to vector<1x8x128xf32>
    %c0_22 = arith.constant 0 : index
    %c2 = arith.constant 2 : index
    %c0_23 = arith.constant 0 : index
    %41 = vector.load %arg6[%c0_22, %c2, %c0_23] : memref<1x16x128xf32, #tpu.memory_space<vmem>>, vector<1x8x128xf32>
    tpu.vector_store %arg6[%c0_22, %c2, %c0_23], %40 {strides = array<i32>} : memref<1x16x128xf32, #tpu.memory_space<vmem>>, vector<1x8x128xf32>,
    %c0_24 = arith.constant 0 : index
    %c0_25 = arith.constant 0 : index
    %c0_26 = arith.constant 0 : index
    %42 = vector.load %arg6[%c0_24, %c0_25, %c0_26] : memref<1x16x128xf32, #tpu.memory_space<vmem>>, vector<1x16x128xf32>
    %43 = vector.shape_cast %42 : vector<1x16x128xf32> to vector<16x128xf32>
    %c0_27 = arith.constant 0 : index
    %c1408 = arith.constant 1408 : index
    %44 = vector.load %arg2[%c0_27, %c1408] : memref<128x2048xf32, #tpu.memory_space<vmem>>, vector<128x640xf32>
    %c0_28 = arith.constant 0 : index
    %c1024 = arith.constant 1024 : index
    %45 = vector.load %arg4[%c0_28, %c1024] : memref<1x1152xf32, #tpu.memory_space<vmem>>, vector<1x128xf32>
    %cst_29 = arith.constant dense<0.000000e+00> : vector<16x640xf32>
    %46 = tpu.matmul %43, %44, %cst_29 {dimension_numbers = #tpu.dot_dimension_numbers<[1], [0], [0], [1], [0, 0, 1, 1], [], []>} : vector<16x128xf32>, vector<128x640xf32>, vector<16x640xf32> -> vector<16x640xf32>
    %47 = vector.shape_cast %46 : vector<16x640xf32> to vector<1x16x640xf32>
    %48 = vector.extract_strided_slice %47 {offsets = [0, 0, 0], sizes = [1, 8, 128], strides = [1, 1, 1]} : vector<1x16x640xf32> to vector<1x8x128xf32>
    %49 = vector.extract_strided_slice %47 {offsets = [0, 1, 128], sizes = [1, 8, 128], strides = [1, 1, 1]} : vector<1x16x640xf32> to vector<1x8x128xf32>
    %50 = vector.extract_strided_slice %47 {offsets = [0, 2, 256], sizes = [1, 8, 128], strides = [1, 1, 1]} : vector<1x16x640xf32> to vector<1x8x128xf32>
    %51 = vector.extract_strided_slice %47 {offsets = [0, 3, 384], sizes = [1, 8, 128], strides = [1, 1, 1]} : vector<1x16x640xf32> to vector<1x8x128xf32>
    %52 = vector.extract_strided_slice %47 {offsets = [0, 4, 512], sizes = [1, 8, 128], strides = [1, 1, 1]} : vector<1x16x640xf32> to vector<1x8x128xf32>
    %53 = arith.addf %48, %49 : vector<1x8x128xf32>
    %54 = arith.addf %50, %51 : vector<1x8x128xf32>
    %55 = arith.addf %53, %54 : vector<1x8x128xf32>
    %56 = vector.shape_cast %45 : vector<1x128xf32> to vector<1x1x128xf32>
    %57 = vector.broadcast %56 : vector<1x1x128xf32> to vector<1x8x128xf32>
    %58 = arith.addf %52, %57 : vector<1x8x128xf32>
    %59 = arith.addf %55, %58 : vector<1x8x128xf32>
    %60 = vector.extract_strided_slice %0 {offsets = [0, 2, 0], sizes = [1, 8, 128], strides = [1, 1, 1]} : vector<1x16x128xf32> to vector<1x8x128xf32>
    %61 = arith.addf %60, %59 : vector<1x8x128xf32>
    %c0_30 = arith.constant 0 : index
    %c0_31 = arith.constant 0 : index
    %c0_32 = arith.constant 0 : index
    %62 = vector.load %arg5[%c0_30, %c0_31, %c0_32] : memref<1x8x128xf32, #tpu.memory_space<vmem>>, vector<1x8x128xf32>
    tpu.vector_store %arg5[%c0_30, %c0_31, %c0_32], %61 {strides = array<i32>} : memref<1x8x128xf32, #tpu.memory_space<vmem>>, vector<1x8x128xf32>,
    return
  }
  func.func @transform_0(%arg0: i32) -> (i32, i32, i32) {
    %c0_i32 = arith.constant 0 : i32
    %c0_i32_0 = arith.constant 0 : i32
    %c0_i32_1 = arith.constant 0 : i32
    return %arg0, %c0_i32, %c0_i32_0 : i32, i32, i32
  }
  func.func @transform_1(%arg0: i32) -> (i32, i32) {
    %c0_i32 = arith.constant 0 : i32
    %c0_i32_0 = arith.constant 0 : i32
    %c0_i32_1 = arith.constant 0 : i32
    return %c0_i32, %c0_i32_0 : i32, i32
  }
  func.func @transform_2(%arg0: i32) -> (i32, i32) {
    %c0_i32 = arith.constant 0 : i32
    %c0_i32_0 = arith.constant 0 : i32
    %c0_i32_1 = arith.constant 0 : i32
    return %c0_i32, %c0_i32_0 : i32, i32
  }
  func.func @transform_3(%arg0: i32) -> (i32, i32) {
    %c0_i32 = arith.constant 0 : i32
    %c0_i32_0 = arith.constant 0 : i32
    %c0_i32_1 = arith.constant 0 : i32
    return %c0_i32, %c0_i32_0 : i32, i32
  }
  func.func @transform_4(%arg0: i32) -> (i32, i32, i32) {
    %c0_i32 = arith.constant 0 : i32
    %c0_i32_0 = arith.constant 0 : i32
    %c0_i32_1 = arith.constant 0 : i32
    return %arg0, %c0_i32, %c0_i32_0 : i32, i32, i32
  }
}

</mosaic_0001>

<bundles_post_ra>
// kernel: block_forward.1
= control target key start
LH: loop header
LB: loop body
LE: loop exit
PB: predicated region body
PF: predicated region fallthrough
CT: control target
= control target key end

     0   :  { %9 = vsyncpa [#allocation4], 0  ;;  %s2182_s15 = smov 0   ;;  %s2436_s0 = inlined_call_operand.vmem [shape: f32[2,16,128], index: 0, kind: input, shape index: {}]   ;;  %s2437_s1 = inlined_call_operand.hbm [shape: f32[128,2048], index: 1, kind: input, shape index: {}]   ;;  %s2438_s2 = inlined_call_operand.vmem [shape: f32[384,128], index: 2, kind: input, shape index: {}]   ;;  %s2439_s3 = inlined_call_operand.vmem [shape: f32[1,1152], index: 3, kind: input, shape index: {}]   ;;  %s2440_s4 = inlined_call_operand.vmem [shape: f32[2,8,128], index: 4, kind: output, shape index: {}]  }
   0x1 LB: > { %s2188_s16 = sadd.s32 4294967295, %s2149_s15   ;;  %p1534_p0 = scmp.ge.s32.totalorder %s2149_s15, 1  ;;  %s2149_s15 = sphi %s2182_s15, %s15_s15  }
   0x2   : > { %p135_p1 = scmp.lt.s32.totalorder %s2149_s15, 3  ;;  %s2151_s17 = smov [#allocation3]  }
   0x3   : > { %s147_s18 = sshll.u32 %s2151_s17, 4  ;;  %p2441_p3 = scmp.eq.s32.totalorder %s2188_s16, 0  ;;  %s148_s18 = int_to_ptr.vmem [resolvable:$true] %s147_s18 }
   0x4   : > { %p2192_p2 = pnand %p1534_p0, %p135_p1  ;;  %s2111_s23 = scalar_lea.hbm %s2437_s1, 32768 }
   0x5   : > { %p2112_p6 = scmp.ne.s32.totalorder %s2437_s1, %s2111_s23  ;;  %p2118_p10 = scmp.lt.u32.totalorder %s2111_s23, %s2437_s1 }
   0x6   : > { %s2443_s19 = scalar_select %p2192_p2, 1, 0 }
   0x7   : > { %p2089_p4 = pneg %p2192_p2 }
   0x9   : > { %p2201_p5 = pnand %p2441_p3, %p2089_p4 }
   0xb   : > { %p2113_p7 = pneg %p2201_p5 }
   0xd   : > { %p2114_p8 = pnand %p2113_p7, %p2112_p6 }
   0xf   : > { %p2115_p9 = pneg %p2114_p8 }
  0x11   : > { %p2120_p11 = pnand %p2118_p10, %p2115_p9 }
  0x13   : > { %2123 = shalt.err (!%p2120_p11)
}
  0x14   : > { %s2124_s28 = scalar_lea.vmem %s148_s18, 32768  ;;  %p2132_p1 = scmp.lt.s32.totalorder %s148_s18, %s148_s18 }
  0x15   : > { %p2125_p12 = scmp.ne.s32.totalorder %s148_s18, %s2124_s28  ;;  %p2133_p4 = scmp.lt.s32.totalorder %s2124_s28, %s2124_s28 }
  0x17   : > { %p2127_p13 = pnand %p2125_p12, %p2113_p7  ;;  %p2134_p3 = por %p2133_p4, %p2132_p1 }
  0x19   : > { %p2128_p0 = pneg %p2127_p13 }
  0x1b   : > { %p2135_p2 = pnand %p2134_p3, %p2128_p0 }
  0x1d   : > { %2138 = shalt.err (!%p2135_p2)
}
  0x1e   : > { %s2152_s29 = smov 2048   ;;  %s2153_s30 = smov 128  }
  0x1f   : > { %2092 = dma.hbm_to_vmem [thread:$0]  (!%p2201_p5), %s2437_s1, 32768, %s148_s18, [#allocation4], %s2152_s29, %s2152_s29, %s2153_s30  }
  0x20   : > { %p2445_p6 = scmp.ne.s32.totalorder %s2443_s19, 0 }
  0x21   : > { %p2446_p8 = scmp.eq.s32.totalorder (!%p2445_p6), %s2188_s16, 0 }
  0x22   : > { %177 = sbr.rel (%p2445_p6) target bundleno = 1063 (0x427), region = 36 }
  0x29   : > { %2144 = dma.done.wait (%p2446_p8), [#allocation4], 32768   ;;  %p2447_p7 = pmov %p2446_p8 }
  0x2a   : > { %v2154_v0 = vmov 0.0   ;;  %v214_v1 = vld [vmem:[#allocation3 + $0x8] sm:$0xff]  ;;  %v216_v3 = vld [vmem:[#allocation3 + $0x18] sm:$0xff]  ;;  %v213_v6 = vld [vmem:[#allocation3] sm:$0xff]  ;;  %p202_p2 = scmp.lt.s32.totalorder %s2188_s16, 1  ;;  %vm524_vm0 = vcmask 1046528  }
  0x2b   : > { %2146 = vsyncadd (%p2447_p7), [#allocation4], 4294934528  ;;  %358 = vmatprep.mubr.f32.mxu0 %v2154_v0  ;;  %1108 = vst [vmem:[#allocation2] sm:$0x3] %v2154_v0  ;;  %434 = vmatprep.mubr.f32.mxu1 %v2154_v0  ;;  %v219_v2 = vld [vmem:[#allocation3 + $0x88] sm:$0xff]  ;;  %v221_v5 = vld [vmem:[#allocation3 + $0x98] sm:$0xff] }
  0x2c   : > { %1109 = vst [vmem:[#allocation2 + $0xa] sm:$0x3f] %v2154_v0  ;;  %v1741_v4 = vpack.c.bf16 %v219_v2, %v214_v1  ;;  %v218_v7 = vld [vmem:[#allocation3 + $0x80] sm:$0xff]  ;;  %v1773_v8 = vpack.c.bf16 %v221_v5, %v216_v3  ;;  %v215_v10 = vld [vmem:[#allocation3 + $0x10] sm:$0xff]  ;;  %v224_v12 = vld [vmem:[#allocation3 + $0x108] sm:$0xff]  ;;  %s2449_s16 = smov (!%p202_p2, %s2188_s16), 1 }
  0x2d   : > { %v1743_v9 = vpack.c.bf16 %v218_v7, %v213_v6  ;;  %v220_v11 = vld [vmem:[#allocation3 + $0x90] sm:$0xff]  ;;  %v229_v14 = vld [vmem:[#allocation3 + $0x188] sm:$0xff]  ;;  %v226_v15 = vld [vmem:[#allocation3 + $0x118] sm:$0xff]  ;;  %s1547_s7 = sshll.u32 %s2449_s16, 4  ;;  %vm541_vm1 = vcmask 1045504   ;;  %vm557_vm2 = vcmask 1043456  }
  0x2e   : > { %1742 = vmatprep.subr.bf16.mxu0 %v1741_v4  ;;  %v1775_v13 = vpack.c.bf16 %v220_v11, %v215_v10  ;;  %v231_v16 = vld [vmem:[#allocation3 + $0x198] sm:$0xff]  ;;  %1774 = vmatprep.subr.bf16.mxu1 %v1773_v8  ;;  %v1745_v17 = vpack.c.bf16 %v229_v14, %v224_v12  ;;  %v223_v19 = vld [vmem:[#allocation3 + $0x100] sm:$0xff]  ;;  %v225_v21 = vld [vmem:[#allocation3 + $0x110] sm:$0xff]  ;;  %s2241_s10 = scalar_lea.vmem %s2436_s0, %s1547_s7  ;;  %vm2156_vm3 = vmmov 0   ;;  %s1541_s25 = sshll.u32 %s2449_s16, 3 }
  0x2f   : > { %1744 = vmatpush1.bf16.msra.mxu0 %v1743_v9  ;;  %v1777_v18 = vpack.c.bf16 %v231_v16, %v226_v15  ;;  %v228_v20 = vld [vmem:[#allocation3 + $0x180] sm:$0xff]  ;;  %v230_v23 = vld [vmem:[#allocation3 + $0x190] sm:$0xff]  ;;  %v234_v24 = vld [vmem:[#allocation3 + $0x208] sm:$0xff]  ;;  %s210_s28 = scalar_lea.vmem %s2440_s4, %s1541_s25 }
  0x30   : > { %1776 = vmatpush1.bf16.msra.mxu1 %v1775_v13  ;;  %v1747_v22 = vpack.c.bf16 %v228_v20, %v223_v19  ;;  %v239_v25 = vld [vmem:[#allocation3 + $0x288] sm:$0xff]  ;;  %1746 = vmatprep.subr.bf16.mxu0 %v1745_v17  ;;  %v1779_v26 = vpack.c.bf16 %v230_v23, %v225_v21  ;;  %v236_v28 = vld [vmem:[#allocation3 + $0x218] sm:$0xff]  ;;  %v233_v30 = vld [vmem:[#allocation3 + $0x200] sm:$0xff] }
  0x31   : > { %1778 = vmatprep.subr.bf16.mxu1 %v1777_v18  ;;  %v1749_v27 = vpack.c.bf16 %v239_v25, %v234_v24  ;;  %v241_v29 = vld [vmem:[#allocation3 + $0x298] sm:$0xff]  ;;  %v238_v32 = vld [vmem:[#allocation3 + $0x280] sm:$0xff]  ;;  %v235_v33 = vld [vmem:[#allocation3 + $0x210] sm:$0xff] }
  0x32   : > { %v1781_v31 = vpack.c.bf16 %v241_v29, %v236_v28  ;;  %v240_v34 = vld [vmem:[#allocation3 + $0x290] sm:$0xff]  ;;  %v1751_v35 = vpack.c.bf16 %v238_v32, %v233_v30  ;;  %v244_v36 = vld [vmem:[#allocation3 + $0x308] sm:$0xff]  ;;  %v246_v38 = vld [vmem:[#allocation3 + $0x318] sm:$0xff] }
  0x33   : > { %1748 = vmatpush1.bf16.msra.mxu0 %v1747_v22  ;;  %v249_v37 = vld [vmem:[#allocation3 + $0x388] sm:$0xff]  ;;  %v1783_v39 = vpack.c.bf16 %v240_v34, %v235_v33  ;;  %v251_v41 = vld [vmem:[#allocation3 + $0x398] sm:$0xff]  ;;  %v243_v42 = vld [vmem:[#allocation3 + $0x300] sm:$0xff] }
  0x34   : > { %1780 = vmatpush1.bf16.msra.mxu1 %v1779_v26  ;;  %1750 = vmatprep.subr.bf16.mxu0 %v1749_v27  ;;  %v1753_v40 = vpack.c.bf16 %v249_v37, %v244_v36  ;;  %v248_v43 = vld [vmem:[#allocation3 + $0x380] sm:$0xff]  ;;  %v1785_v44 = vpack.c.bf16 %v251_v41, %v246_v38  ;;  %v245_v45 = vld [vmem:[#allocation3 + $0x310] sm:$0xff]  ;;  %v254_v47 = vld [vmem:[#allocation3 + $0x408] sm:$0xff] }
  0x35   : > { %1782 = vmatprep.subr.bf16.mxu1 %v1781_v31  ;;  %v250_v46 = vld [vmem:[#allocation3 + $0x390] sm:$0xff]  ;;  %v259_v48 = vld [vmem:[#allocation3 + $0x488] sm:$0xff]  ;;  %v256_v49 = vld [vmem:[#allocation3 + $0x418] sm:$0xff]  ;;  %v1755_v51 = vpack.c.bf16 %v248_v43, %v243_v42 }
  0x36   : > { %v261_v50 = vld [vmem:[#allocation3 + $0x498] sm:$0xff]  ;;  %v1787_v52 = vpack.c.bf16 %v250_v46, %v245_v45  ;;  %v1757_v53 = vpack.c.bf16 %v259_v48, %v254_v47  ;;  %v253_v54 = vld [vmem:[#allocation3 + $0x400] sm:$0xff]  ;;  %v255_v56 = vld [vmem:[#allocation3 + $0x410] sm:$0xff] }
  0x37   : > { %1752 = vmatpush1.bf16.msra.mxu0 %v1751_v35  ;;  %v258_v55 = vld [vmem:[#allocation3 + $0x480] sm:$0xff]  ;;  %v1789_v57 = vpack.c.bf16 %v261_v50, %v256_v49  ;;  %v260_v58 = vld [vmem:[#allocation3 + $0x490] sm:$0xff]  ;;  %v264_v59 = vld [vmem:[#allocation3 + $0x508] sm:$0xff] }
  0x38   : > { %1784 = vmatpush1.bf16.msra.mxu1 %v1783_v39  ;;  %1754 = vmatprep.subr.bf16.mxu0 %v1753_v40  ;;  %v269_v60 = vld [vmem:[#allocation3 + $0x588] sm:$0xff]  ;;  %v266_v61 = vld [vmem:[#allocation3 + $0x518] sm:$0xff]  ;;  %v1759_v63 = vpack.c.bf16 %v258_v55, %v253_v54  ;;  %v1791_v1 = vpack.c.bf16 %v260_v58, %v255_v56  ;;  %v263_v3 = vld [vmem:[#allocation3 + $0x500] sm:$0xff] }
  0x39   : > { %1786 = vmatprep.subr.bf16.mxu1 %v1785_v44  ;;  %v271_v62 = vld [vmem:[#allocation3 + $0x598] sm:$0xff]  ;;  %v1761_v2 = vpack.c.bf16 %v269_v60, %v264_v59  ;;  %v268_v4 = vld [vmem:[#allocation3 + $0x580] sm:$0xff]  ;;  %v265_v5 = vld [vmem:[#allocation3 + $0x510] sm:$0xff] }
  0x3a   : > { %v1793_v6 = vpack.c.bf16 %v271_v62, %v266_v61  ;;  %v270_v7 = vld [vmem:[#allocation3 + $0x590] sm:$0xff]  ;;  %v274_v8 = vld [vmem:[#allocation3 + $0x608] sm:$0xff]  ;;  %v276_v10 = vld [vmem:[#allocation3 + $0x618] sm:$0xff]  ;;  %v1763_v12 = vpack.c.bf16 %v268_v4, %v263_v3 }
  0x3b   : > { %1756 = vmatpush1.bf16.msra.mxu0 %v1755_v51  ;;  %v279_v9 = vld [vmem:[#allocation3 + $0x688] sm:$0xff]  ;;  %v281_v11 = vld [vmem:[#allocation3 + $0x698] sm:$0xff]  ;;  %v1795_v13 = vpack.c.bf16 %v270_v7, %v265_v5  ;;  %v273_v15 = vld [vmem:[#allocation3 + $0x600] sm:$0xff] }
  0x3c   : > { %1788 = vmatpush1.bf16.msra.mxu1 %v1787_v52  ;;  %1758 = vmatprep.subr.bf16.mxu0 %v1757_v53  ;;  %v1765_v14 = vpack.c.bf16 %v279_v9, %v274_v8  ;;  %v278_v16 = vld [vmem:[#allocation3 + $0x680] sm:$0xff]  ;;  %v275_v17 = vld [vmem:[#allocation3 + $0x610] sm:$0xff]  ;;  %v1797_v18 = vpack.c.bf16 %v281_v11, %v276_v10  ;;  %v284_v20 = vld [vmem:[#allocation3 + $0x708] sm:$0xff] }
  0x3d   : > { %1790 = vmatprep.subr.bf16.mxu1 %v1789_v57  ;;  %v280_v19 = vld [vmem:[#allocation3 + $0x690] sm:$0xff]  ;;  %v289_v21 = vld [vmem:[#allocation3 + $0x788] sm:$0xff]  ;;  %v286_v22 = vld [vmem:[#allocation3 + $0x718] sm:$0xff]  ;;  %v1767_v24 = vpack.c.bf16 %v278_v16, %v273_v15 }
  0x3e   : > { %v291_v23 = vld [vmem:[#allocation3 + $0x798] sm:$0xff]  ;;  %v1799_v25 = vpack.c.bf16 %v280_v19, %v275_v17  ;;  %v1769_v26 = vpack.c.bf16 %v289_v21, %v284_v20  ;;  %v283_v27 = vld [vmem:[#allocation3 + $0x700] sm:$0xff]  ;;  %v285_v29 = vld [vmem:[#allocation3 + $0x710] sm:$0xff] }
  0x3f   : > { %1760 = vmatpush1.bf16.msra.mxu0 %v1759_v63  ;;  %v288_v28 = vld [vmem:[#allocation3 + $0x780] sm:$0xff]  ;;  %v1801_v30 = vpack.c.bf16 %v291_v23, %v286_v22  ;;  %v290_v31 = vld [vmem:[#allocation3 + $0x790] sm:$0xff]  ;;  %v212_v43 = vld [vmem:[%s2241_s10 + $0x8] sm:$0xff] }
  0x40   : > { %1792 = vmatpush1.bf16.msra.mxu1 %v1791_v1  ;;  %1762 = vmatprep.subr.bf16.mxu0 %v1761_v2  ;;  %v217_v32 = vld [vmem:[#allocation3 + $0x20] sm:$0xff]  ;;  %v1771_v34 = vpack.c.bf16 %v288_v28, %v283_v27  ;;  %v1803_v35 = vpack.c.bf16 %v290_v31, %v285_v29  ;;  %v211_v39 = vld [vmem:[%s2241_s10] sm:$0xff]  ;;  %v563_v63 = vld [vmem:[#allocation3 + $0x28] sm:$0xff] }
  0x41   : > { %1794 = vmatprep.subr.bf16.mxu1 %v1793_v6  ;;  %v222_v33 = vld [vmem:[#allocation3 + $0xa0] sm:$0xff]  ;;  %v564_v60 = vld [vmem:[#allocation3 + $0x30] sm:$0xff]  ;;  %v569_v1 = vld [vmem:[#allocation3 + $0xa8] sm:$0xff] }
  0x42   : > { %v1805_v36 = vpack.c.bf16 %v222_v33, %v217_v32  ;;  %v227_v37 = vld [vmem:[#allocation3 + $0x120] sm:$0xff]  ;;  %v570_v61 = vld [vmem:[#allocation3 + $0xb0] sm:$0xff]  ;;  %v1839_v3 = vpack.c.bf16 %v569_v1, %v563_v63  ;;  %v565_v5 = vld [vmem:[#allocation3 + $0x38] sm:$0xff] }
  0x43   : > { %1764 = vmatpush1.bf16.msra.mxu0 %v1763_v12  ;;  %v232_v38 = vld [vmem:[#allocation3 + $0x1a0] sm:$0xff]  ;;  %v1837_v62 = vpack.c.bf16 %v570_v61, %v564_v60  ;;  %v571_v6 = vld [vmem:[#allocation3 + $0xb8] sm:$0xff]  ;;  %v576_v9 = vld [vmem:[#allocation3 + $0x130] sm:$0xff] }
  0x44   : > { %1796 = vmatpush1.bf16.msra.mxu1 %v1795_v13  ;;  %1766 = vmatprep.subr.bf16.mxu0 %v1765_v14  ;;  %v1809_v40 = vpack.c.bf16 %v232_v38, %v227_v37  ;;  %v237_v41 = vld [vmem:[#allocation3 + $0x220] sm:$0xff]  ;;  %v1871_v8 = vpack.c.bf16 %v571_v6, %v565_v5  ;;  %v582_v10 = vld [vmem:[#allocation3 + $0x1b0] sm:$0xff]  ;;  %v575_v12 = vld [vmem:[#allocation3 + $0x128] sm:$0xff] }
  0x45   : > { %1798 = vmatprep.subr.bf16.mxu1 %v1797_v18  ;;  %v242_v42 = vld [vmem:[#allocation3 + $0x2a0] sm:$0xff]  ;;  %v1841_v11 = vpack.c.bf16 %v582_v10, %v576_v9  ;;  %v581_v13 = vld [vmem:[#allocation3 + $0x1a8] sm:$0xff]  ;;  %v577_v17 = vld [vmem:[#allocation3 + $0x138] sm:$0xff] }
  0x46   : > { %v1813_v44 = vpack.c.bf16 %v242_v42, %v237_v41  ;;  %v247_v45 = vld [vmem:[#allocation3 + $0x320] sm:$0xff]  ;;  %v1843_v15 = vpack.c.bf16 %v581_v13, %v575_v12  ;;  %v583_v18 = vld [vmem:[#allocation3 + $0x1b8] sm:$0xff]  ;;  %v588_v21 = vld [vmem:[#allocation3 + $0x230] sm:$0xff] }
  0x47   : > { %1768 = vmatpush1.bf16.msra.mxu0 %v1767_v24  ;;  %v252_v46 = vld [vmem:[#allocation3 + $0x3a0] sm:$0xff]  ;;  %v1875_v20 = vpack.c.bf16 %v583_v18, %v577_v17  ;;  %v594_v22 = vld [vmem:[#allocation3 + $0x2b0] sm:$0xff]  ;;  %v587_v23 = vld [vmem:[#allocation3 + $0x228] sm:$0xff] }
  0x48   : > { %1800 = vmatpush1.bf16.msra.mxu1 %v1799_v25  ;;  %1770 = vmatprep.subr.bf16.mxu0 %v1769_v26  ;;  %v1817_v47 = vpack.c.bf16 %v252_v46, %v247_v45  ;;  %v257_v48 = vld [vmem:[#allocation3 + $0x420] sm:$0xff]  ;;  %v1845_v24 = vpack.c.bf16 %v594_v22, %v588_v21  ;;  %v593_v25 = vld [vmem:[#allocation3 + $0x2a8] sm:$0xff]  ;;  %v595_v31 = vld [vmem:[#allocation3 + $0x2b8] sm:$0xff] }
  0x49   : > { %1802 = vmatprep.subr.bf16.mxu1 %v1801_v30  ;;  %v262_v49 = vld [vmem:[#allocation3 + $0x4a0] sm:$0xff]  ;;  %v1847_v28 = vpack.c.bf16 %v593_v25, %v587_v23  ;;  %v589_v30 = vld [vmem:[#allocation3 + $0x238] sm:$0xff]  ;;  %v600_v32 = vld [vmem:[#allocation3 + $0x330] sm:$0xff] }
  0x4a   : > { %v1821_v50 = vpack.c.bf16 %v262_v49, %v257_v48  ;;  %v267_v51 = vld [vmem:[#allocation3 + $0x520] sm:$0xff]  ;;  %v1879_v33 = vpack.c.bf16 %v595_v31, %v589_v30  ;;  %v601_v41 = vld [vmem:[#allocation3 + $0x338] sm:$0xff]  ;;  %v618_v45 = vld [vmem:[#allocation3 + $0x4b0] sm:$0xff] }
  0x4b   : > { %1772 = vmatpush1.bf16.msra.mxu0 %v1771_v34  ;;  %v272_v52 = vld [vmem:[#allocation3 + $0x5a0] sm:$0xff]  ;;  %v606_v34 = vld [vmem:[#allocation3 + $0x3b0] sm:$0xff]  ;;  %v611_v48 = vld [vmem:[#allocation3 + $0x428] sm:$0xff] }
  0x4c   : > { %1804 = vmatpush1.bf16.msra.mxu1 %v1803_v35  ;;  %1806 = vmatprep.subr.bf16.mxu0 %v1805_v36  ;;  %v1825_v53 = vpack.c.bf16 %v272_v52, %v267_v51  ;;  %v277_v54 = vld [vmem:[#allocation3 + $0x620] sm:$0xff]  ;;  %v599_v35 = vld [vmem:[#allocation3 + $0x328] sm:$0xff]  ;;  %v1849_v37 = vpack.c.bf16 %v606_v34, %v600_v32  ;;  %v613_v52 = vld [vmem:[#allocation3 + $0x438] sm:$0xff] }
  0x4d   : > { %v282_v55 = vld [vmem:[#allocation3 + $0x6a0] sm:$0xff]  ;;  %1838 = vmatprep.subr.bf16.mxu1 %v1837_v62  ;;  %v617_v49 = vld [vmem:[#allocation3 + $0x4a8] sm:$0xff]  ;;  %v636_v6 = vld [vmem:[#allocation3 + $0x630] sm:$0xff] }
  0x4e   : > { %359 = vmatmul.mubr.f32.vlgmr.msra.gmra.mrb[0].mxu0 %v211_v39  ;;  %v1829_v56 = vpack.c.bf16 %v282_v55, %v277_v54  ;;  %v287_v57 = vld [vmem:[#allocation3 + $0x720] sm:$0xff]  ;;  %v1855_v54 = vpack.c.bf16 %v617_v49, %v611_v48  ;;  %v629_v60 = vld [vmem:[#allocation3 + $0x5a8] sm:$0xff]  ;;  %v648_v18 = vld [vmem:[#allocation3 + $0x730] sm:$0xff] }
  0x4f   : > { %435 = vmatmul.mubr.f32.vlgmr.msra.gmra.mrb[0].mxu1 %v211_v39  ;;  %1808 = vmatpush3.bf16.msra.mxu0 %v1805_v36  ;;  %v292_v58 = vld [vmem:[#allocation3 + $0x7a0] sm:$0xff]  ;;  %v605_v36 = vld [vmem:[#allocation3 + $0x3a8] sm:$0xff]  ;;  %v568_v30 = vld [vmem:[#allocation3 + $0x50] sm:$0xff] }
  0x50   : > { %364 = vmatprep.mubr.f32.mxu0 %v2154_v0  ;;  %440 = vmatprep.mubr.f32.mxu1 %v2154_v0  ;;  %v1833_v59 = vpack.c.bf16 %v292_v58, %v287_v57  ;;  %v566_v2 = vld [vmem:[#allocation3 + $0x40] sm:$0xff]  ;;  %v1851_v38 = vpack.c.bf16 %v605_v36, %v599_v35  ;;  %v630_v57 = vld [vmem:[#allocation3 + $0x5b0] sm:$0xff]  ;;  %v623_v58 = vld [vmem:[#allocation3 + $0x528] sm:$0xff] }
  0x51   : > { %1810 = vmatprep.subr.bf16.mxu0 %v1809_v40  ;;  %v572_v4 = vld [vmem:[#allocation3 + $0xc0] sm:$0xff]  ;;  %1840 = vmatpush1.bf16.msra.mxu1 %v1839_v3  ;;  %v631_v3 = vld [vmem:[#allocation3 + $0x5b8] sm:$0xff]  ;;  %v635_v9 = vld [vmem:[#allocation3 + $0x628] sm:$0xff] }
  0x52   : > { %365 = vmatmul.mubr.f32.gmra.mrb[2].mxu0 %v212_v43  ;;  %v1869_v7 = vpack.c.bf16 %v572_v4, %v566_v2  ;;  %v578_v14 = vld [vmem:[#allocation3 + $0x140] sm:$0xff]  ;;  %1842 = vmatprep.subr.bf16.mxu1 %v1841_v11  ;;  %v625_v2 = vld [vmem:[#allocation3 + $0x538] sm:$0xff]  ;;  %v1859_v4 = vpack.c.bf16 %v629_v60, %v623_v58  ;;  %v641_v10 = vld [vmem:[#allocation3 + $0x6a8] sm:$0xff] }
  0x53   : > { %441 = vmatmul.mubr.f32.gmra.mrb[2].mxu1 %v212_v43  ;;  %1812 = vmatpush3.bf16.msra.mxu0 %v1809_v40  ;;  %v584_v16 = vld [vmem:[#allocation3 + $0x1c0] sm:$0xff]  ;;  %v1891_v5 = vpack.c.bf16 %v631_v3, %v625_v2  ;;  %v1863_v12 = vpack.c.bf16 %v641_v10, %v635_v9  ;;  %v647_v21 = vld [vmem:[#allocation3 + $0x728] sm:$0xff]  ;;  %v574_v31 = vld [vmem:[#allocation3 + $0xd0] sm:$0xff] }
  0x54   : > { %1814 = vmatprep.subr.bf16.mxu0 %v1813_v44  ;;  %1668 = vmatprep.mubr.f32.mxu0 %v211_v39  ;;  %v1873_v19 = vpack.c.bf16 %v584_v16, %v578_v14  ;;  %v590_v26 = vld [vmem:[#allocation3 + $0x240] sm:$0xff]  ;;  %v637_v14 = vld [vmem:[#allocation3 + $0x638] sm:$0xff]  ;;  %v653_v22 = vld [vmem:[#allocation3 + $0x7a8] sm:$0xff]  ;;  %v1901_v32 = vpack.c.bf16 %v574_v31, %v568_v30 }
  0x55   : > { %755 = vmatprep.mubr.f32.mxu1 %v2154_v0  ;;  %1844 = vmatpush1.bf16.msra.mxu1 %v1843_v15  ;;  %v596_v27 = vld [vmem:[#allocation3 + $0x2c0] sm:$0xff]  ;;  %v643_v15 = vld [vmem:[#allocation3 + $0x6b8] sm:$0xff]  ;;  %v567_v60 = vld [vmem:[#allocation3 + $0x48] sm:$0xff] }
  0x56   : > { %v1877_v29 = vpack.c.bf16 %v596_v27, %v590_v26  ;;  %1846 = vmatprep.subr.bf16.mxu1 %v1845_v24  ;;  %v602_v39 = vld [vmem:[#allocation3 + $0x340] sm:$0xff]  ;;  %v1895_v17 = vpack.c.bf16 %v643_v15, %v637_v14  ;;  %v1867_v24 = vpack.c.bf16 %v653_v22, %v647_v21  ;;  %v649_v26 = vld [vmem:[#allocation3 + $0x738] sm:$0xff]  ;;  %v598_v9 = vld [vmem:[#allocation3 + $0x2d0] sm:$0xff] }
  0x57   : > { %1816 = vmatpush3.bf16.msra.mxu0 %v1813_v44  ;;  %v608_v40 = vld [vmem:[#allocation3 + $0x3c0] sm:$0xff]  ;;  %v612_v44 = vld [vmem:[#allocation3 + $0x430] sm:$0xff]  ;;  %v655_v27 = vld [vmem:[#allocation3 + $0x7b8] sm:$0xff] }
  0x58   : > { %1818 = vmatprep.subr.bf16.mxu0 %v1817_v47  ;;  %v1881_v42 = vpack.c.bf16 %v608_v40, %v602_v39  ;;  %v620_v51 = vld [vmem:[#allocation3 + $0x4c0] sm:$0xff]  ;;  %v604_v14 = vld [vmem:[#allocation3 + $0x350] sm:$0xff]  ;;  %v627_v30 = vld [vmem:[#allocation3 + $0x548] sm:$0xff] }
  0x59   : > { %1848 = vmatpush1.bf16.msra.mxu1 %v1847_v28  ;;  %v626_v61 = vld [vmem:[#allocation3 + $0x540] sm:$0xff]  ;;  %v610_v15 = vld [vmem:[#allocation3 + $0x3d0] sm:$0xff]  ;;  %v633_v31 = vld [vmem:[#allocation3 + $0x5c8] sm:$0xff] }
  0x5a   : > { %1850 = vmatprep.subr.bf16.mxu1 %v1849_v37  ;;  %v632_v62 = vld [vmem:[#allocation3 + $0x5c0] sm:$0xff]  ;;  %v622_v21 = vld [vmem:[#allocation3 + $0x4d0] sm:$0xff] }
  0x5b   : > { %1820 = vmatpush3.bf16.msra.mxu0 %v1817_v47  ;;  %v1853_v47 = vpack.c.bf16 %v618_v45, %v612_v44  ;;  %v1889_v1 = vpack.c.bf16 %v632_v62, %v626_v61  ;;  %v638_v11 = vld [vmem:[#allocation3 + $0x640] sm:$0xff]  ;;  %v573_v61 = vld [vmem:[#allocation3 + $0xc8] sm:$0xff] }
  0x5c   : > { %1822 = vmatprep.subr.bf16.mxu0 %v1821_v50  ;;  %v644_v13 = vld [vmem:[#allocation3 + $0x6c0] sm:$0xff]  ;;  %v1903_v3 = vpack.c.bf16 %v573_v61, %v567_v60  ;;  %v948_v61 = vld [vmem:[%s2438_s2 + $0x118] sm:$0xff] }
  0x5d   : > { %1852 = vmatpush1.bf16.msra.mxu1 %v1851_v38  ;;  %v1893_v16 = vpack.c.bf16 %v644_v13, %v638_v11  ;;  %v650_v23 = vld [vmem:[#allocation3 + $0x740] sm:$0xff]  ;;  %v597_v13 = vld [vmem:[#allocation3 + $0x2c8] sm:$0xff] }
  0x5e   : > { %1854 = vmatprep.subr.bf16.mxu1 %v1853_v47  ;;  %v656_v25 = vld [vmem:[#allocation3 + $0x7c0] sm:$0xff] }
  0x5f   : > { %1824 = vmatpush3.bf16.msra.mxu0 %v1821_v50  ;;  %v614_v50 = vld [vmem:[#allocation3 + $0x440] sm:$0xff]  ;;  %v1897_v28 = vpack.c.bf16 %v656_v25, %v650_v23  ;;  %v621_v25 = vld [vmem:[#allocation3 + $0x4c8] sm:$0xff] }
  0x60   : > { %1826 = vmatprep.subr.bf16.mxu0 %v1825_v53  ;;  %v1885_v55 = vpack.c.bf16 %v620_v51, %v614_v50  ;;  %v947_v60 = vld [vmem:[%s2438_s2 + $0x110] sm:$0xff] }
  0x61   : > { %1856 = vmatpush1.bf16.msra.mxu1 %v1855_v54  ;;  %v1542_v54 = vld [vmem:[%s2439_s3] ss:$0 sm:$0xff] }
  0x63   : > { %1828 = vmatpush3.bf16.msra.mxu0 %v1825_v53  ;;  %v619_v53 = vld [vmem:[#allocation3 + $0x4b8] sm:$0xff] }
  0x64   : > { %1830 = vmatprep.subr.bf16.mxu0 %v1829_v56  ;;  %v1887_v63 = vpack.c.bf16 %v619_v53, %v613_v52 }
  0x67   : > { %1832 = vmatpush3.bf16.msra.mxu0 %v1829_v56  ;;  %v624_v56 = vld [vmem:[#allocation3 + $0x530] sm:$0xff] }
  0x68   : > { %1834 = vmatprep.subr.bf16.mxu0 %v1833_v59 }
  0x6b   : > { %1836 = vmatpush3.bf16.msra.mxu0 %v1833_v59  ;;  %v1857_v59 = vpack.c.bf16 %v630_v57, %v624_v56 }
  0x6c   : > { %1870 = vmatprep.subr.bf16.mxu0 %v1869_v7  ;;  %v642_v7 = vld [vmem:[#allocation3 + $0x6b0] sm:$0xff] }
  0x6d   : > { %1858 = vmatprep.subr.bf16.mxu1 %v1857_v59 }
  0x6e   : > { %1669 = vmatmul.mubr.f32.vlgmr.msra.gmra.mrb[4].mxu0 %v212_v43  ;;  %v607_v43 = vld [vmem:[#allocation3 + $0x3b8] sm:$0xff]  ;;  %1860 = vmatpush1.bf16.msra.mxu1 %v1859_v4 }
  0x6f   : > { %826 = vmatprep.mubr.f32.mxu0 %v2154_v0  ;;  %1872 = vmatpush1.bf16.msra.mxu0 %v1871_v8  ;;  %v1883_v46 = vpack.c.bf16 %v607_v43, %v601_v41  ;;  %v1861_v8 = vpack.c.bf16 %v642_v7, %v636_v6  ;;  %v579_v6 = vld [vmem:[#allocation3 + $0x148] sm:$0xff] }
  0x70   : > { %1874 = vmatprep.subr.bf16.mxu0 %v1873_v19  ;;  %v654_v19 = vld [vmem:[#allocation3 + $0x7b0] sm:$0xff]  ;;  %v585_v7 = vld [vmem:[#allocation3 + $0x1c8] sm:$0xff] }
  0x71   : > { %1862 = vmatprep.subr.bf16.mxu1 %v1861_v8  ;;  %v592_v8 = vld [vmem:[#allocation3 + $0x250] sm:$0xff]  ;;  %v1907_v10 = vpack.c.bf16 %v585_v7, %v579_v6  ;;  %v950_v7 = vld [vmem:[%s2438_s2 + $0x128] sm:$0xff] }
  0x72   : > { %1864 = vmatpush1.bf16.msra.mxu1 %v1863_v12  ;;  %v1909_v11 = vpack.c.bf16 %v598_v9, %v592_v8  ;;  %v591_v12 = vld [vmem:[#allocation3 + $0x248] sm:$0xff]  ;;  %v949_v6 = vld [vmem:[%s2438_s2 + $0x120] sm:$0xff]  ;;  %v935_v9 = vld [vmem:[%s2438_s2 + $0xb0] sm:$0xff] }
  0x73   : > { %1876 = vmatpush1.bf16.msra.mxu0 %v1875_v20  ;;  %v1865_v20 = vpack.c.bf16 %v654_v19, %v648_v18  ;;  %v603_v18 = vld [vmem:[#allocation3 + $0x348] sm:$0xff] }
  0x74   : > { %1878 = vmatprep.subr.bf16.mxu0 %v1877_v29  ;;  %v1899_v29 = vpack.c.bf16 %v655_v27, %v649_v26  ;;  %v609_v19 = vld [vmem:[#allocation3 + $0x3c8] sm:$0xff]  ;;  %v628_v26 = vld [vmem:[#allocation3 + $0x550] sm:$0xff] }
  0x75   : > { %1866 = vmatprep.subr.bf16.mxu1 %v1865_v20  ;;  %v616_v20 = vld [vmem:[#allocation3 + $0x450] sm:$0xff]  ;;  %v1915_v22 = vpack.c.bf16 %v609_v19, %v603_v18  ;;  %v938_v18 = vld [vmem:[%s2438_s2 + $0xc8] sm:$0xff] }
  0x76   : > { %1868 = vmatpush1.bf16.msra.mxu1 %v1867_v24  ;;  %v1917_v23 = vpack.c.bf16 %v622_v21, %v616_v20  ;;  %v615_v24 = vld [vmem:[#allocation3 + $0x448] sm:$0xff]  ;;  %v634_v27 = vld [vmem:[#allocation3 + $0x5d0] sm:$0xff] }
  0x77   : > { %1880 = vmatpush1.bf16.msra.mxu0 %v1879_v33  ;;  %1902 = vmatprep.subr.bf16.mxu1 %v1901_v32  ;;  %v640_v32 = vld [vmem:[#allocation3 + $0x650] sm:$0xff] }
  0x78   : > { %1882 = vmatprep.subr.bf16.mxu0 %v1881_v42 }
  0x7b   : > { %1884 = vmatpush1.bf16.msra.mxu0 %v1883_v46 }
  0x7c   : > { %1886 = vmatprep.subr.bf16.mxu0 %v1885_v55 }
  0x7f   : > { %1888 = vmatpush1.bf16.msra.mxu0 %v1887_v63  ;;  %v580_v63 = vld [vmem:[#allocation3 + $0x150] sm:$0xff] }
  0x80   : > { %1890 = vmatprep.subr.bf16.mxu0 %v1889_v1  ;;  %v586_v1 = vld [vmem:[#allocation3 + $0x1d0] sm:$0xff] }
  0x83   : > { %1892 = vmatpush1.bf16.msra.mxu0 %v1891_v5  ;;  %v1905_v5 = vpack.c.bf16 %v586_v1, %v580_v63  ;;  %v1969_v63 = vpack.c.bf16 %v948_v61, %v947_v60  ;;  %v933_v1 = vld [vmem:[%s2438_s2 + $0xa0] sm:$0xff] }
  0x84   : > { %1894 = vmatprep.subr.bf16.mxu0 %v1893_v16  ;;  %v1911_v16 = vpack.c.bf16 %v597_v13, %v591_v12  ;;  %v919_v13 = vld [vmem:[%s2438_s2 + $0x30] sm:$0xff]  ;;  %v1121_v60 = vld [vmem:[#allocation3 + $0xf0] sm:$0xff] }
  0x87   : > { %1896 = vmatpush1.bf16.msra.mxu0 %v1895_v17  ;;  %v1913_v17 = vpack.c.bf16 %v610_v15, %v604_v14  ;;  %v920_v14 = vld [vmem:[%s2438_s2 + $0x38] sm:$0xff]  ;;  %v951_v15 = vld [vmem:[%s2438_s2 + $0x130] sm:$0xff] }
  0x88   : > { %1898 = vmatprep.subr.bf16.mxu0 %v1897_v28  ;;  %v1919_v28 = vpack.c.bf16 %v621_v25, %v615_v24  ;;  %v1947_v19 = vpack.c.bf16 %v920_v14, %v919_v13  ;;  %v953_v24 = vld [vmem:[%s2438_s2 + $0x140] sm:$0xff]  ;;  %v954_v25 = vld [vmem:[%s2438_s2 + $0x148] sm:$0xff] }
  0x8b   : > { %1900 = vmatpush1.bf16.msra.mxu0 %v1899_v29  ;;  %v1921_v29 = vpack.c.bf16 %v634_v27, %v628_v26  ;;  %v939_v26 = vld [vmem:[%s2438_s2 + $0xd0] sm:$0xff]  ;;  %v940_v27 = vld [vmem:[%s2438_s2 + $0xd8] sm:$0xff] }
 0x121   : > { %v360_v33 = vpop.f32.mrb[0].mxu0 }
 0x122   : > { %v362_v34 = vpop.f32.mrb[1].mxu0  ;;  %v436_v35 = vpop.f32.mrb[0].mxu1 }
 0x123   : > { %v438_v36 = vpop.f32.mrb[1].mxu1  ;;  %v525_v41 = vrot.slane %v362_v34, 1  ;;  %v1923_v34 = vpack.c.bf16 %v633_v31, %v627_v30  ;;  %v1953_v30 = vpack.c.bf16 %v940_v27, %v939_v26  ;;  %v923_v31 = vld [vmem:[%s2438_s2 + $0x50] sm:$0xff]  ;;  %v1113_v26 = vld [vmem:[#allocation3 + $0x58] sm:$0xff] }
 0x124   : > { %v532_v38 = vrot.slane %v438_v36, 1  ;;  %v639_v36 = vld [vmem:[#allocation3 + $0x648] sm:$0xff]  ;;  %v1118_v27 = vld [vmem:[#allocation3 + $0xd8] sm:$0xff] }
 0x125   : > { %v366_v37 = vpop.f32.mrb[2].mxu0 }
 0x126   : > { %v442_v39 = vpop.f32.mrb[2].mxu1  ;;  %v367_v40 = vpop.f32.mrb[3].mxu0  ;;  %v645_v37 = vld [vmem:[#allocation3 + $0x6c8] sm:$0xff] }
 0x127   : > { %v526_v42 = vrot.slane %v367_v40, 1  ;;  %v444_v43 = vpop.f32.mrb[3].mxu1  ;;  %v1927_v40 = vpack.c.bf16 %v645_v37, %v639_v36  ;;  %v942_v36 = vld [vmem:[%s2438_s2 + $0xe8] sm:$0xff] }
 0x128   : > { %v533_v44 = vrot.slane %v444_v43, 1  ;;  %v657_v43 = vld [vmem:[#allocation3 + $0x7c8] sm:$0xff] }
 0x129   : > { %v527_v45 = vsel %vm524_vm0, %v525_v41, %v526_v42  ;;  %v651_v42 = vld [vmem:[#allocation3 + $0x748] sm:$0xff] }
 0x12a   : > { %v529_v46 = vadd.f32 %v527_v45, %v360_v33  ;;  %v534_v47 = vsel %vm524_vm0, %v532_v38, %v533_v44  ;;  %v538_v48 = vadd.f32 %v533_v44, %v442_v39  ;;  %v646_v33 = vld [vmem:[#allocation3 + $0x6d0] sm:$0xff]  ;;  %v1931_v44 = vpack.c.bf16 %v657_v43, %v651_v42  ;;  %v958_v43 = vld [vmem:[%s2438_s2 + $0x168] sm:$0xff] }
 0x12b   : > { %v537_v49 = vadd.f32 %v534_v47, %v436_v35  ;;  %v1925_v35 = vpack.c.bf16 %v646_v33, %v640_v32  ;;  %v652_v38 = vld [vmem:[#allocation3 + $0x750] sm:$0xff]  ;;  %v924_v32 = vld [vmem:[%s2438_s2 + $0x58] sm:$0xff]  ;;  %v955_v33 = vld [vmem:[%s2438_s2 + $0x150] sm:$0xff] }
 0x12c   : > { %v543_v50 = vrot.slane %v538_v48, 2  ;;  %v658_v39 = vld [vmem:[#allocation3 + $0x7d0] sm:$0xff]  ;;  %v1955_v37 = vpack.c.bf16 %v924_v32, %v923_v31  ;;  %v1124_v31 = vld [vmem:[#allocation3 + $0x160] sm:$0xff] }
 0x12d   : > { %v542_v51 = vrot.slane %v537_v49, 2  ;;  %v1929_v41 = vpack.c.bf16 %v658_v39, %v652_v38  ;;  %v929_v45 = vld [vmem:[%s2438_s2 + $0x80] sm:$0xff]  ;;  %v914_v49 = vld [vmem:[%s2438_s2 + $0x8] sm:$0xff] }
 0x12e   : > { %v913_v48 = vld [vmem:[%s2438_s2] sm:$0xff] }
 0x12f   : > { %v544_v52 = vsel %vm541_vm1, %v542_v51, %v543_v50  ;;  %v945_v50 = vld [vmem:[%s2438_s2 + $0x100] sm:$0xff]  ;;  %v1935_v51 = vpack.c.bf16 %v914_v49, %v913_v48  ;;  %v927_v49 = vld [vmem:[%s2438_s2 + $0x70] sm:$0xff] }
 0x130   : > { %v546_v53 = vadd.f32 %v544_v52, %v529_v46  ;;  %v930_v46 = vld [vmem:[%s2438_s2 + $0x88] sm:$0xff]  ;;  %v957_v42 = vld [vmem:[%s2438_s2 + $0x160] sm:$0xff] }
 0x131   : > { %v1933_v47 = vpack.c.bf16 %v930_v46, %v929_v45  ;;  %v946_v52 = vld [vmem:[%s2438_s2 + $0x108] sm:$0xff]  ;;  %v1984_v45 = vpack.c.bf16 %v958_v43, %v957_v42  ;;  %v943_v46 = vld [vmem:[%s2438_s2 + $0xf0] sm:$0xff] }
 0x132   : > { %v1123_v43 = vld [vmem:[#allocation3 + $0x158] sm:$0xff] }
 0x133   : > { %1934 = vmatprep.subr.bf16.mxu0 %v1933_v47  ;;  %v944_v47 = vld [vmem:[%s2438_s2 + $0xf8] sm:$0xff] }
 0x134   : > { %v1961_v48 = vpack.c.bf16 %v944_v47, %v943_v46 }
 0x141   : > { %v1670_v55 = vpop.f32.mrb[4].mxu0 }
 0x142   : > { %v554_v56 = vadd.f32 %v1670_v55, %v1542_v54  ;;  %v513_v57 = vpop.f32.mrb[5].mxu0  ;;  %v931_v55 = vld [vmem:[%s2438_s2 + $0x90] sm:$0xff] }
 0x143   : > { %v553_v58 = vadd.f32 %v1542_v54, %v513_v57  ;;  %v1966_v54 = vpack.c.bf16 %v946_v52, %v945_v50  ;;  %v915_v57 = vld [vmem:[%s2438_s2 + $0x10] sm:$0xff]  ;;  %v928_v50 = vld [vmem:[%s2438_s2 + $0x78] sm:$0xff] }
 0x144   : > { %v559_v59 = vrot.slane %v554_v56, 4  ;;  %v932_v56 = vld [vmem:[%s2438_s2 + $0x98] sm:$0xff]  ;;  %v1963_v52 = vpack.c.bf16 %v928_v50, %v927_v49  ;;  %v1134_v50 = vld [vmem:[#allocation3 + $0x260] sm:$0xff] }
 0x145   : > { %v558_v62 = vrot.slane %v553_v58, 4  ;;  %v1937_v58 = vpack.c.bf16 %v932_v56, %v931_v55  ;;  %v1114_v56 = vld [vmem:[#allocation3 + $0x60] sm:$0xff]  ;;  %v1130_v49 = vld [vmem:[#allocation3 + $0x1e8] sm:$0xff] }
 0x147   : > { %v560_v2 = vsel %vm557_vm2, %v558_v62, %v559_v59  ;;  %v916_v59 = vld [vmem:[%s2438_s2 + $0x18] sm:$0xff] }
 0x148   : > { %v562_v4 = vadd.f32 %v560_v2, %v546_v53  ;;  %v2155_v53 = vmov 0.0|0.0   ;;  %v1939_v62 = vpack.c.bf16 %v916_v59, %v915_v57  ;;  %v934_v2 = vld [vmem:[%s2438_s2 + $0xa8] sm:$0xff]  ;;  %v1119_v57 = vld [vmem:[#allocation3 + $0xe0] sm:$0xff]  ;;  %v1116_v59 = vld [vmem:[#allocation3 + $0x70] sm:$0xff] }
 0x149   : > { %v2021_v61 = vpack.c.bf16 %v1121_v60, %v1116_v59 }
 0x14a   : > { %756 = vmatmul.mubr.f32.vlgmr.msra.gmra.mrb[4].mxu1 %v562_v4  ;;  %827 = vmatmul.mubr.f32.vlgmr.msra.gmra.mrb[6].mxu0 %v562_v4 }
 0x14b   : > { %1904 = vmatpush1.bf16.msra.mxu1 %v1903_v3  ;;  %897 = vmatprep.mubr.f32.mxu1 %v2154_v0  ;;  %v917_v3 = vld [vmem:[%s2438_s2 + $0x20] sm:$0xff] }
 0x14c   : > { %1906 = vmatprep.subr.bf16.mxu1 %v1905_v5  ;;  %1936 = vmatpush3.bf16.msra.mxu0 %v1935_v51  ;;  %v918_v5 = vld [vmem:[%s2438_s2 + $0x28] sm:$0xff]  ;;  %v959_v51 = vld [vmem:[%s2438_s2 + $0x170] sm:$0xff] }
 0x14d   : > { %1938 = vmatprep.subr.bf16.mxu0 %v1937_v58  ;;  %v1943_v8 = vpack.c.bf16 %v918_v5, %v917_v3  ;;  %v1989_v58 = vpack.c.bf16 %v1119_v57, %v1114_v56  ;;  %v1133_v57 = vld [vmem:[#allocation3 + $0x258] sm:$0xff] }
 0x14f   : > { %1908 = vmatpush1.bf16.msra.mxu1 %v1907_v10  ;;  %v936_v10 = vld [vmem:[%s2438_s2 + $0xb8] sm:$0xff] }
 0x150   : > { %1910 = vmatprep.subr.bf16.mxu1 %v1909_v11  ;;  %1940 = vmatpush3.bf16.msra.mxu0 %v1939_v62  ;;  %v1972_v11 = vpack.c.bf16 %v950_v7, %v949_v6  ;;  %v1945_v12 = vpack.c.bf16 %v936_v10, %v935_v9 }
 0x153   : > { %1912 = vmatpush1.bf16.msra.mxu1 %v1911_v16  ;;  %v952_v16 = vld [vmem:[%s2438_s2 + $0x138] sm:$0xff] }
 0x154   : > { %1914 = vmatprep.subr.bf16.mxu1 %v1913_v17  ;;  %v937_v17 = vld [vmem:[%s2438_s2 + $0xc0] sm:$0xff]  ;;  %v1975_v20 = vpack.c.bf16 %v952_v16, %v951_v15 }
 0x155   : > { %v1949_v21 = vpack.c.bf16 %v938_v18, %v937_v17 }
 0x157   : > { %1916 = vmatpush1.bf16.msra.mxu1 %v1915_v22  ;;  %v921_v22 = vld [vmem:[%s2438_s2 + $0x40] sm:$0xff] }
 0x158   : > { %1918 = vmatprep.subr.bf16.mxu1 %v1917_v23  ;;  %v922_v23 = vld [vmem:[%s2438_s2 + $0x48] sm:$0xff] }
 0x15b   : > { %1920 = vmatpush1.bf16.msra.mxu1 %v1919_v28  ;;  %v1951_v28 = vpack.c.bf16 %v922_v23, %v921_v22 }
 0x15c   : > { %1922 = vmatprep.subr.bf16.mxu1 %v1921_v29  ;;  %v1978_v29 = vpack.c.bf16 %v954_v25, %v953_v24 }
 0x15f   : > { %1924 = vmatpush1.bf16.msra.mxu1 %v1923_v34  ;;  %v956_v34 = vld [vmem:[%s2438_s2 + $0x158] sm:$0xff] }
 0x160   : > { %1926 = vmatprep.subr.bf16.mxu1 %v1925_v35  ;;  %v941_v35 = vld [vmem:[%s2438_s2 + $0xe0] sm:$0xff]  ;;  %v1981_v38 = vpack.c.bf16 %v956_v34, %v955_v33 }
 0x161   : > { %v1957_v39 = vpack.c.bf16 %v942_v36, %v941_v35  ;;  %v1129_v35 = vld [vmem:[#allocation3 + $0x1e0] sm:$0xff]  ;;  %v1126_v36 = vld [vmem:[#allocation3 + $0x170] sm:$0xff] }
 0x162   : > { %v1993_v46 = vpack.c.bf16 %v1129_v35, %v1124_v31 }
 0x163   : > { %1928 = vmatpush1.bf16.msra.mxu1 %v1927_v40  ;;  %v925_v40 = vld [vmem:[%s2438_s2 + $0x60] sm:$0xff] }
 0x164   : > { %1930 = vmatprep.subr.bf16.mxu1 %v1929_v41  ;;  %v926_v41 = vld [vmem:[%s2438_s2 + $0x68] sm:$0xff] }
 0x167   : > { %1932 = vmatpush1.bf16.msra.mxu1 %v1931_v44  ;;  %v1959_v44 = vpack.c.bf16 %v926_v41, %v925_v40  ;;  %v1991_v41 = vpack.c.bf16 %v1118_v27, %v1113_v26  ;;  %v1169_v26 = vld [vmem:[#allocation3 + $0x5e0] sm:$0xff] }
 0x168   : > { %1965 = vmatprep.subr.bf16.mxu1 %v2155_v53 }
 0x16a   : > { %898 = vmatmul.mubr.f32.vlgmr.msra.gmra.mrb[6].mxu1 %v562_v4  ;;  %v1941_v4 = vpack.c.bf16 %v934_v2, %v933_v1  ;;  %v659_v1 = vld [vmem:[%s2439_s3 + $0x1] sm:$0x3f] }
 0x16b   : > { %1967 = vmatpush3.bf16.msra.mxu1 %v1966_v54  ;;  %v960_v54 = vld [vmem:[%s2438_s2 + $0x178] sm:$0xff]  ;;  %1703 = vmatprep.mubr.msk.f32.mxu1 %vm2156_vm3, %v2154_v0 }
 0x16c   : > { %1968 = vmatprep.subr.bf16.mxu1 %v2155_v53  ;;  %1942 = vmatprep.subr.bf16.mxu0 %v1941_v4  ;;  %v1987_v55 = vpack.c.bf16 %v960_v54, %v959_v51  ;;  %v1139_v51 = vld [vmem:[#allocation3 + $0x2e0] sm:$0xff]  ;;  %v1141_v54 = vld [vmem:[#allocation3 + $0x2f0] sm:$0xff] }
 0x16d   : > { %1944 = vmatpush3.bf16.msra.mxu0 %v1943_v8  ;;  %v1997_v59 = vpack.c.bf16 %v1139_v51, %v1134_v50  ;;  %v1189_v50 = vld [vmem:[#allocation3 + $0x7e0] sm:$0xff]  ;;  %v1183_v51 = vld [vmem:[#allocation3 + $0x758] sm:$0xff] }
 0x16e   : > { %1946 = vmatprep.subr.bf16.mxu0 %v1945_v12 }
 0x16f   : > { %1970 = vmatpush3.bf16.msra.mxu1 %v1969_v63 }
 0x170   : > { %1971 = vmatprep.subr.bf16.mxu1 %v2155_v53 }
 0x171   : > { %1948 = vmatpush3.bf16.msra.mxu0 %v1947_v19 }
 0x172   : > { %1950 = vmatprep.subr.bf16.mxu0 %v1949_v21 }
 0x173   : > { %1973 = vmatpush3.bf16.msra.mxu1 %v1972_v11 }
 0x174   : > { %1974 = vmatprep.subr.bf16.mxu1 %v2155_v53 }
 0x175   : > { %1952 = vmatpush3.bf16.msra.mxu0 %v1951_v28 }
 0x176   : > { %1954 = vmatprep.subr.bf16.mxu0 %v1953_v30  ;;  %v1120_v30 = vld [vmem:[#allocation3 + $0xe8] sm:$0xff] }
 0x177   : > { %1976 = vmatpush3.bf16.msra.mxu1 %v1975_v20 }
 0x178   : > { %1977 = vmatprep.subr.bf16.mxu1 %v2155_v53 }
 0x179   : > { %1956 = vmatpush3.bf16.msra.mxu0 %v1955_v37  ;;  %v1131_v37 = vld [vmem:[#allocation3 + $0x1f0] sm:$0xff] }
 0x17a   : > { %1958 = vmatprep.subr.bf16.mxu0 %v1957_v39  ;;  %v2025_v47 = vpack.c.bf16 %v1131_v37, %v1126_v36  ;;  %v1174_v37 = vld [vmem:[#allocation3 + $0x660] sm:$0xff] }
 0x17b   : > { %1979 = vmatpush3.bf16.msra.mxu1 %v1978_v29  ;;  %v1115_v29 = vld [vmem:[#allocation3 + $0x68] sm:$0xff] }
 0x17c   : > { %1980 = vmatprep.subr.bf16.mxu1 %v2155_v53  ;;  %v2023_v42 = vpack.c.bf16 %v1120_v30, %v1115_v29  ;;  %v1168_v29 = vld [vmem:[#allocation3 + $0x5d8] sm:$0xff]  ;;  %v1166_v30 = vld [vmem:[#allocation3 + $0x570] sm:$0xff] }
 0x17d   : > { %1960 = vmatpush3.bf16.msra.mxu0 %v1959_v44  ;;  %v1128_v44 = vld [vmem:[#allocation3 + $0x1d8] sm:$0xff] }
 0x17e   : > { %1962 = vmatprep.subr.bf16.mxu0 %v1961_v48  ;;  %v1125_v48 = vld [vmem:[#allocation3 + $0x168] sm:$0xff] }
 0x17f   : > { %1982 = vmatpush3.bf16.msra.mxu1 %v1981_v38  ;;  %v2027_v56 = vpack.c.bf16 %v1130_v49, %v1125_v48  ;;  %v1184_v49 = vld [vmem:[#allocation3 + $0x760] sm:$0xff] }
 0x180   : > { %1983 = vmatprep.subr.bf16.mxu1 %v2155_v53 }
 0x181   : > { %1964 = vmatpush3.bf16.msra.mxu0 %v1963_v52  ;;  %v1136_v52 = vld [vmem:[#allocation3 + $0x270] sm:$0xff] }
 0x182   : > { %1990 = vmatprep.subr.bf16.mxu0 %v1989_v58  ;;  %v1138_v58 = vld [vmem:[#allocation3 + $0x2d8] sm:$0xff]  ;;  %v2029_v60 = vpack.c.bf16 %v1141_v54, %v1136_v52  ;;  %v2017_v52 = vpack.c.bf16 %v1189_v50, %v1184_v49 }
 0x183   : > { %1985 = vmatpush3.bf16.msra.mxu1 %v1984_v45  ;;  %v1188_v54 = vld [vmem:[#allocation3 + $0x7d8] sm:$0xff] }
 0x184   : > { %1986 = vmatprep.subr.bf16.mxu1 %v2155_v53  ;;  %v661_v53 = vlaneseq }
 0x186   : > { %v662_v62 = vshrl.u32 %v661_v53, 7  ;;  %v1140_v53 = vld [vmem:[#allocation3 + $0x2e8] sm:$0xff] }
 0x187   : > { %1988 = vmatpush3.bf16.msra.mxu1 %v1987_v55  ;;  %v1995_v55 = vpack.c.bf16 %v1128_v44, %v1123_v43  ;;  %v1181_v44 = vld [vmem:[#allocation3 + $0x6f0] sm:$0xff] }
 0x188   : > { %2022 = vmatprep.subr.bf16.mxu1 %v2021_v61  ;;  %v663_v63 = vsub.s32 0, %v662_v62  ;;  %v675_v3 = vsub.s32 3, %v662_v62  ;;  %v667_v14 = vsub.s32 1, %v662_v62  ;;  %v671_v15 = vsub.s32 2, %v662_v62  ;;  %v1135_v61 = vld [vmem:[#allocation3 + $0x268] sm:$0xff] }
 0x189   : > { %v679_v19 = vsub.s32 4, %v662_v62  ;;  %v683_v21 = vsub.s32 5, %v662_v62  ;;  %v1144_v62 = vld [vmem:[#allocation3 + $0x360] sm:$0xff] }
 0x18a   : > { %v664_v2 = vrot.slane %v659_v1, %v663_v63  ;;  %v676_v8 = vrot.slane %v659_v1, %v675_v3  ;;  %v668_v16 = vrot.slane %v659_v1, %v667_v14  ;;  %v672_v17 = vrot.slane %v659_v1, %v671_v15  ;;  %v1149_v63 = vld [vmem:[#allocation3 + $0x3e0] sm:$0xff] }
 0x18b   : > { %v680_v23 = vrot.slane %v659_v1, %v679_v19  ;;  %v684_v25 = vrot.slane %v659_v1, %v683_v21  ;;  %v1146_v1 = vld [vmem:[#allocation3 + $0x370] sm:$0xff]  ;;  %v1999_v3 = vpack.c.bf16 %v1138_v58, %v1133_v57  ;;  %v1155_v21 = vld [vmem:[#allocation3 + $0x468] sm:$0xff]  ;;  %v2019_v57 = vpack.c.bf16 %v1188_v54, %v1183_v51 }
 0x21d   : > { %v757_v4 = vpop.f32.mrb[4].mxu1  ;;  %v828_v5 = vpop.f32.mrb[6].mxu0 }
 0x21e   : > { %v758_v6 = vadd.f32 %v757_v4, %v664_v2  ;;  %v759_v7 = vpop.f32.mrb[5].mxu1  ;;  %v830_v9 = vpop.f32.mrb[7].mxu0  ;;  %v829_v20 = vadd.f32 %v828_v5, %v672_v17  ;;  %v1151_v2 = vld [vmem:[#allocation3 + $0x3f0] sm:$0xff]  ;;  %v2031_v4 = vpack.c.bf16 %v1140_v53, %v1135_v61  ;;  %v1143_v5 = vld [vmem:[#allocation3 + $0x358] sm:$0xff] }
 0x21f   : > { %v831_v12 = vadd.f32 %v830_v9, %v676_v8  ;;  %v760_v18 = vadd.f32 %v759_v7, %v668_v16  ;;  %v1148_v7 = vld [vmem:[#allocation3 + $0x3d8] sm:$0xff]  ;;  %v2033_v8 = vpack.c.bf16 %v1151_v2, %v1146_v1  ;;  %v1145_v9 = vld [vmem:[#allocation3 + $0x368] sm:$0xff] }
 0x220   : > { %v904_v10 = vmax.f32 %v758_v6, 0.0  ;;  %v906_v24 = vmax.f32 %v829_v20, 0.0  ;;  %v2001_v6 = vpack.c.bf16 %v1149_v63, %v1144_v62  ;;  %v1153_v16 = vld [vmem:[#allocation3 + $0x458] sm:$0xff]  ;;  %v1161_v20 = vld [vmem:[#allocation3 + $0x4f0] sm:$0xff] }
 0x221   : > { %v905_v22 = vmax.f32 %v760_v18, 0.0  ;;  %v1158_v17 = vld [vmem:[#allocation3 + $0x4d8] sm:$0xff]  ;;  %v1156_v18 = vld [vmem:[#allocation3 + $0x470] sm:$0xff] }
 0x222   : > { %v907_v11 = vmin.f32 %v904_v10, 6.0  ;;  %v909_v38 = vmin.f32 %v906_v24, 6.0  ;;  %v1150_v10 = vld [vmem:[#allocation3 + $0x3e8] sm:$0xff]  ;;  %v2007_v19 = vpack.c.bf16 %v1158_v17, %v1153_v16  ;;  %v1117_v61 = vld [vmem:[#allocation3 + $0x78] sm:$0xff] }
 0x223   : > { %v908_v32 = vmin.f32 %v905_v22, 6.0  ;;  %v2035_v14 = vpack.c.bf16 %v1150_v10, %v1145_v9  ;;  %v1160_v22 = vld [vmem:[#allocation3 + $0x4e8] sm:$0xff]  ;;  %v1122_v62 = vld [vmem:[#allocation3 + $0xf8] sm:$0xff] }
 0x224   : > { %v910_v13 = vmul.f32 %v907_v11, %v831_v12  ;;  %v1154_v11 = vld [vmem:[#allocation3 + $0x460] sm:$0xff]  ;;  %v2039_v24 = vpack.c.bf16 %v1160_v22, %v1155_v21  ;;  %v2053_v63 = vpack.c.bf16 %v1122_v62, %v1117_v61  ;;  %v1127_v9 = vld [vmem:[#allocation3 + $0x178] sm:$0xff]  ;;  %v2109_v62 = vld [vmem:[%s2241_s10] sm:$0xff] }
 0x225   : > { %v1159_v12 = vld [vmem:[#allocation3 + $0x4e0] sm:$0xff]  ;;  %v1132_v10 = vld [vmem:[#allocation3 + $0x1f8] sm:$0xff] }
 0x226   : > { %v2005_v15 = vpack.c.bf16 %v1159_v12, %v1154_v11  ;;  %v2057_v11 = vpack.c.bf16 %v1132_v10, %v1127_v9  ;;  %v1147_v17 = vld [vmem:[#allocation3 + $0x378] sm:$0xff] }
 0x227   : > { %v1162_v21 = vld [vmem:[#allocation3 + $0x4f8] sm:$0xff] }
 0x23d   : > { %v899_v28 = vpop.f32.mrb[6].mxu1 }
 0x23e   : > { %v900_v33 = vadd.f32 %v899_v28, %v680_v23  ;;  %v901_v34 = vpop.f32.mrb[7].mxu1  ;;  %v2037_v23 = vpack.c.bf16 %v1161_v20, %v1156_v18  ;;  %v1163_v28 = vld [vmem:[#allocation3 + $0x558] sm:$0xff] }
 0x23f   : > { %v902_v39 = vadd.f32 %v901_v34, %v684_v25  ;;  %v1164_v25 = vld [vmem:[#allocation3 + $0x560] sm:$0xff]  ;;  %v2011_v31 = vpack.c.bf16 %v1168_v29, %v1163_v28  ;;  %v1170_v34 = vld [vmem:[#allocation3 + $0x5e8] sm:$0xff]  ;;  %v1152_v18 = vld [vmem:[#allocation3 + $0x3f8] sm:$0xff] }
 0x240   : > { %v911_v40 = vmul.f32 %v908_v32, %v900_v33  ;;  %v2009_v27 = vpack.c.bf16 %v1169_v26, %v1164_v25  ;;  %v1171_v32 = vld [vmem:[#allocation3 + $0x5f0] sm:$0xff]  ;;  %v1165_v33 = vld [vmem:[#allocation3 + $0x568] sm:$0xff]  ;;  %v1157_v20 = vld [vmem:[#allocation3 + $0x478] sm:$0xff] }
 0x241   : > { %v912_v45 = vmul.f32 %v909_v38, %v902_v39  ;;  %v2041_v35 = vpack.c.bf16 %v1171_v32, %v1166_v30  ;;  %v2043_v36 = vpack.c.bf16 %v1170_v34, %v1165_v33  ;;  %v1179_v38 = vld [vmem:[#allocation3 + $0x6e0] sm:$0xff]  ;;  %v2069_v22 = vpack.c.bf16 %v1162_v21, %v1157_v20  ;;  %v1177_v25 = vld [vmem:[#allocation3 + $0x678] sm:$0xff] }
 0x242   : > { %1032 = vmatprep.mubr.f32.mxu0 %v911_v40  ;;  %v2013_v39 = vpack.c.bf16 %v1179_v38, %v1174_v37  ;;  %v1173_v40 = vld [vmem:[#allocation3 + $0x658] sm:$0xff] }
 0x243   : > { %1033 = vmatmul.mubr.f32.vlgmr.msra.gmra.mrb[8].mxu0 %v910_v13  ;;  %1704 = vmatmul.mubr.f32.vlgmr.msra.gmra.mrb[8].mxu1 %v912_v45  ;;  %v2003_v13 = vpack.c.bf16 %v1148_v7, %v1143_v5  ;;  %v1175_v45 = vld [vmem:[#allocation3 + $0x668] sm:$0xff]  ;;  %v1182_v26 = vld [vmem:[#allocation3 + $0x6f8] sm:$0xff] }
 0x244   : > { %1992 = vmatpush1.bf16.msra.mxu0 %v1991_v41  ;;  %2024 = vmatpush1.bf16.msra.mxu1 %v2023_v42  ;;  %v1178_v41 = vld [vmem:[#allocation3 + $0x6d8] sm:$0xff]  ;;  %v1176_v42 = vld [vmem:[#allocation3 + $0x670] sm:$0xff] }
 0x245   : > { %1994 = vmatprep.subr.bf16.mxu0 %v1993_v46  ;;  %2026 = vmatprep.subr.bf16.mxu1 %v2025_v47  ;;  %v2015_v43 = vpack.c.bf16 %v1178_v41, %v1173_v40  ;;  %v1180_v46 = vld [vmem:[#allocation3 + $0x6e8] sm:$0xff]  ;;  %v2045_v47 = vpack.c.bf16 %v1181_v44, %v1176_v42  ;;  %v1187_v28 = vld [vmem:[#allocation3 + $0x778] sm:$0xff] }
 0x246   : > { %1258 = vmatprep.mubr.f32.mxu0 %v2154_v0  ;;  %1334 = vmatprep.mubr.f32.mxu1 %v2154_v0  ;;  %v2047_v48 = vpack.c.bf16 %v1180_v46, %v1175_v45  ;;  %v1192_v29 = vld [vmem:[#allocation3 + $0x7f8] sm:$0xff] }
 0x247   : > { %v2081_v30 = vpack.c.bf16 %v1192_v29, %v1187_v28 }
 0x248   : > { %1996 = vmatpush1.bf16.msra.mxu0 %v1995_v55  ;;  %2028 = vmatpush1.bf16.msra.mxu1 %v2027_v56  ;;  %v1186_v55 = vld [vmem:[#allocation3 + $0x770] sm:$0xff] }
 0x249   : > { %1998 = vmatprep.subr.bf16.mxu0 %v1997_v59  ;;  %2030 = vmatprep.subr.bf16.mxu1 %v2029_v60  ;;  %v1191_v56 = vld [vmem:[#allocation3 + $0x7f0] sm:$0xff]  ;;  %v1185_v59 = vld [vmem:[#allocation3 + $0x768] sm:$0xff] }
 0x24a   : > { %v2049_v58 = vpack.c.bf16 %v1191_v56, %v1186_v55  ;;  %v1190_v60 = vld [vmem:[#allocation3 + $0x7e8] sm:$0xff] }
 0x24b   : > { %v2051_v53 = vpack.c.bf16 %v1190_v60, %v1185_v59 }
 0x24c   : > { %2000 = vmatpush1.bf16.msra.mxu0 %v1999_v3  ;;  %2032 = vmatpush1.bf16.msra.mxu1 %v2031_v4  ;;  %v1543_v3 = vld [vmem:[%s2439_s3 + $0x7] ss:$0 sm:$0xff] }
 0x24d   : > { %2002 = vmatprep.subr.bf16.mxu0 %v2001_v6  ;;  %2034 = vmatprep.subr.bf16.mxu1 %v2033_v8 }
 0x250   : > { %2004 = vmatpush1.bf16.msra.mxu0 %v2003_v13  ;;  %2036 = vmatpush1.bf16.msra.mxu1 %v2035_v14  ;;  %v1137_v13 = vld [vmem:[#allocation3 + $0x278] sm:$0xff] }
 0x251   : > { %2006 = vmatprep.subr.bf16.mxu0 %v2005_v15  ;;  %2038 = vmatprep.subr.bf16.mxu1 %v2037_v23  ;;  %v1142_v14 = vld [vmem:[#allocation3 + $0x2f8] sm:$0xff] }
 0x252   : > { %v2061_v15 = vpack.c.bf16 %v1142_v14, %v1137_v13  ;;  %v1167_v23 = vld [vmem:[#allocation3 + $0x578] sm:$0xff] }
 0x254   : > { %2008 = vmatpush1.bf16.msra.mxu0 %v2007_v19  ;;  %2040 = vmatpush1.bf16.msra.mxu1 %v2039_v24  ;;  %v2065_v19 = vpack.c.bf16 %v1152_v18, %v1147_v17  ;;  %v1172_v24 = vld [vmem:[#allocation3 + $0x5f8] sm:$0xff] }
 0x255   : > { %2010 = vmatprep.subr.bf16.mxu0 %v2009_v27  ;;  %2042 = vmatprep.subr.bf16.mxu1 %v2041_v35  ;;  %v2077_v27 = vpack.c.bf16 %v1182_v26, %v1177_v25 }
 0x258   : > { %2012 = vmatpush1.bf16.msra.mxu0 %v2011_v31  ;;  %2044 = vmatpush1.bf16.msra.mxu1 %v2043_v36 }
 0x259   : > { %2014 = vmatprep.subr.bf16.mxu0 %v2013_v39  ;;  %2046 = vmatprep.subr.bf16.mxu1 %v2045_v47 }
 0x25c   : > { %2016 = vmatpush1.bf16.msra.mxu0 %v2015_v43  ;;  %2048 = vmatpush1.bf16.msra.mxu1 %v2047_v48 }
 0x25d   : > { %2018 = vmatprep.subr.bf16.mxu0 %v2017_v52  ;;  %2050 = vmatprep.subr.bf16.mxu1 %v2049_v58  ;;  %v1544_v52 = vld [vmem:[%s2439_s3 + $0x8] ss:$0 sm:$0xff] }
 0x260   : > { %2020 = vmatpush1.bf16.msra.mxu0 %v2019_v57  ;;  %2052 = vmatpush1.bf16.msra.mxu1 %v2051_v53 }
 0x261   : > { %2054 = vmatprep.subr.bf16.mxu0 %v2053_v63 }
 0x316   : > { %v1598_v1 = vpop.f32.mrb[8].mxu0  ;;  %v1104_v2 = vpop.f32.mrb[8].mxu1 }
 0x317   : > { %v1599_v4 = vpop.f32.mrb[9].mxu0  ;;  %v1705_v5 = vpop.f32.mrb[9].mxu1 }
 0x318   : > { %v1600_v6 = vadd.f32 %v1599_v4, %v1598_v1  ;;  %v2110_v1 = vld [vmem:[%s2241_s10 + $0x8] sm:$0xff] }
 0x31a   : > { %v1035_v7 = vadd.f32 %v1600_v6, %v1543_v3 }
 0x31c   : > { %v1105_v8 = vadd.f32 %v1104_v2, %v1035_v7 }
 0x31e   : > { %1110 = vst [vmem:[#allocation2 + $0x2] sm:$0xff] %v1105_v8 }
 0x325   : > { %v1111_v12 = vld [vmem:[#allocation2] sm:$0xff]  ;;  %v1112_v16 = vld [vmem:[#allocation2 + $0x8] sm:$0xff] }
 0x326   : > { %1259 = vmatmul.mubr.f32.vlgmr.msra.gmra.mrb[10].mxu0 %v1111_v12  ;;  %1335 = vmatmul.mubr.f32.vlgmr.msra.gmra.mrb[10].mxu1 %v1111_v12 }
 0x327   : > { %2056 = vmatpush3.bf16.msra.mxu0 %v2053_v63  ;;  %1264 = vmatprep.mubr.f32.mxu0 %v2154_v0 }
 0x328   : > { %1340 = vmatprep.mubr.f32.mxu1 %v2154_v0  ;;  %2058 = vmatprep.subr.bf16.mxu0 %v2057_v11  ;;  %v2073_v0 = vpack.c.bf16 %v1172_v24, %v1167_v23 }
 0x32a   : > { %1265 = vmatmul.mubr.f32.gmra.mrb[12].mxu0 %v1112_v16  ;;  %1341 = vmatmul.mubr.f32.gmra.mrb[12].mxu1 %v1112_v16 }
 0x32b   : > { %2060 = vmatpush3.bf16.msra.mxu0 %v2057_v11  ;;  %1738 = vmatprep.mubr.f32.mxu0 %v1111_v12 }
 0x32c   : > { %2062 = vmatprep.subr.bf16.mxu0 %v2061_v15 }
 0x32f   : > { %2064 = vmatpush3.bf16.msra.mxu0 %v2061_v15 }
 0x330   : > { %2066 = vmatprep.subr.bf16.mxu0 %v2065_v19 }
 0x333   : > { %2068 = vmatpush3.bf16.msra.mxu0 %v2065_v19 }
 0x334   : > { %2070 = vmatprep.subr.bf16.mxu0 %v2069_v22 }
 0x337   : > { %2072 = vmatpush3.bf16.msra.mxu0 %v2069_v22 }
 0x338   : > { %2074 = vmatprep.subr.bf16.mxu0 %v2073_v0 }
 0x33b   : > { %2076 = vmatpush3.bf16.msra.mxu0 %v2073_v0 }
 0x33c   : > { %2078 = vmatprep.subr.bf16.mxu0 %v2077_v27 }
 0x33f   : > { %2080 = vmatpush3.bf16.msra.mxu0 %v2077_v27 }
 0x340   : > { %2082 = vmatprep.subr.bf16.mxu0 %v2081_v30 }
 0x343   : > { %2084 = vmatpush3.bf16.msra.mxu0 %v2081_v30 }
 0x346   : > { %1739 = vmatmul.mubr.f32.vlgmr.msra.gmra.mrb[14].mxu0 %v1112_v16 }
 0x3f9   : > { %v1260_v31 = vpop.f32.mrb[10].mxu0  ;;  %v1336_v32 = vpop.f32.mrb[10].mxu1 }
 0x3fa   : > { %v1262_v33 = vpop.f32.mrb[11].mxu0  ;;  %v1338_v34 = vpop.f32.mrb[11].mxu1 }
 0x3fb   : > { %v1424_v39 = vrot.slane %v1262_v33, 1  ;;  %v1431_v40 = vrot.slane %v1338_v34, 1 }
 0x3fd   : > { %v1266_v35 = vpop.f32.mrb[12].mxu0  ;;  %v1342_v36 = vpop.f32.mrb[12].mxu1 }
 0x3fe   : > { %v1267_v37 = vpop.f32.mrb[13].mxu0  ;;  %v1344_v38 = vpop.f32.mrb[13].mxu1 }
 0x3ff   : > { %v1425_v41 = vrot.slane %v1267_v37, 1  ;;  %v1432_v42 = vrot.slane %v1344_v38, 1 }
 0x401   : > { %v1426_v43 = vsel %vm524_vm0, %v1424_v39, %v1425_v41  ;;  %v1433_v44 = vsel %vm524_vm0, %v1431_v40, %v1432_v42  ;;  %v1437_v45 = vadd.f32 %v1432_v42, %v1342_v36 }
 0x402   : > { %v1428_v46 = vadd.f32 %v1426_v43, %v1260_v31  ;;  %v1436_v47 = vadd.f32 %v1433_v44, %v1336_v32 }
 0x403   : > { %v1441_v48 = vrot.slane %v1437_v45, 2 }
 0x404   : > { %v1440_v49 = vrot.slane %v1436_v47, 2 }
 0x406   : > { %v1442_v50 = vsel %vm541_vm1, %v1440_v49, %v1441_v48 }
 0x407   : > { %v1444_v51 = vadd.f32 %v1442_v50, %v1428_v46 }
 0x419   : > { %v1740_v54 = vpop.f32.mrb[14].mxu0 }
 0x41a   : > { %v1452_v55 = vadd.f32 %v1740_v54, %v1544_v52  ;;  %v1413_v56 = vpop.f32.mrb[15].mxu0 }
 0x41b   : > { %v1451_v57 = vadd.f32 %v1544_v52, %v1413_v56 }
 0x41c   : > { %v1456_v58 = vrot.slane %v1452_v55, 4 }
 0x41d   : > { %v1455_v59 = vrot.slane %v1451_v57, 4 }
 0x41f   : > { %v1457_v60 = vsel %vm557_vm2, %v1455_v59, %v1456_v58 }
 0x420   : > { %v1459_v61 = vadd.f32 %v1457_v60, %v1444_v51 }
 0x422   : > { %v1461_v53 = vrot.slane %v1459_v61, 6 }
 0x424   : > { %v1463_v63 = vadd.f32 %v2109_v62, %v1461_v53  ;;  %v1464_v2 = vadd.f32 %v2110_v1, %v1461_v53 }
 0x426   : > { %1465 = vst [vmem:[%s210_s28 - $0x2] sm:$0xfc] %v1463_v63  ;;  %1466 = vst [vmem:[%s210_s28 + $0x6] sm:$0x3] %v1464_v2 }
 0x427 PF: > { %s15_s15 = sadd.s32 1, %s2149_s15  }
 0x428   : > { %p12_p3 = scmp.ge.s32.totalorder %s15_s15, 4  }
 0x42a   :  { %14 = sbr.rel (!%p12_p3) target bundleno = 1 (0x1), region = 71 }
 0x431   :  { %1486 = vsyncpa [#allocation4], 1 }
 0x432   :  { %1488 = vsyncpa [#allocation4 + $0x1], 1 }

</bundles_post_ra>
